<compile_context>
chip_gen: v6e
topology: v6e:2x2x1
jax: 0.10.0
libtpu: 0.0.40
codegen_flags: <defaults>
</compile_context>

<pallas_src>
import functools

import jax
import jax.numpy as jnp
from jax import lax
from jax.experimental import pallas as pl
from jax.experimental.pallas import tpu as pltpu


def _round_up(n, m):
    return ((n + m - 1) // m) * m


# ------------------------- in-kernel value helpers -------------------------- #

def _shift_flat(v, k):
    """out[:, q] = v[:, (q + k) % Q] for a static shift k (two lane slices)."""
    Q = v.shape[-1]
    k = k % Q
    if k == 0:
        return v
    return jnp.concatenate([v[:, k:], v[:, :k]], axis=-1)


def _reflect_shift(v, dy, dx, *, H, W, row_idx, col_idx):
    """out[:, y*W + x] = v[:, reflH(y + dy) * W + reflW(x + dx)].

    reflH / reflW are PyTorch ReflectionPad2d reflections of widths |dy| / |dx|.
    `v` is a (C, H*W) value with W-contiguous rows; all shifts are static, so
    this lowers to lane concats plus jnp.where boundary patches on tiny
    (<= 8 sublane) data -- the big tensors never go through a padded buffer.
    """
    # horizontal (within rows)
    a = _shift_flat(v, dx)
    for j in range(abs(dx)):
        if dx > 0:
            out_col = W - dx + j                      # source col = W - 2 - j
            fix = _shift_flat(v, dx - 2 - 2 * j)
        else:
            out_col = j                               # source col = |dx| - j
            fix = _shift_flat(v, -dx - 2 * j)
        a = jnp.where(col_idx == out_col, fix, a)
    # vertical (whole rows)
    b = _shift_flat(a, dy * W)
    for j in range(abs(dy)):
        if dy > 0:
            out_row = H - dy + j                      # source row = H - 2 - j
            fix = _shift_flat(a, (dy - 2 - 2 * j) * W)
        else:
            out_row = j                               # source row = |dy| - j
            fix = _shift_flat(a, (-dy - 2 * j) * W)
        b = jnp.where(row_idx == out_row, fix, b)
    return b


# ------------------------------- fused kernel ------------------------------- #

def _resnet_block_kernel(x_ref, w1_ref, w2_ref, rc_ref, o_ref, *, H, W, dilation):
    # x_ref  : (1, Cp, H*W)    input, channels zero-padded to Cp (multiple of 8)
    # w1_ref : (Chid, 9*Cp)    conv1 weights, column blocks of Cp per (kh, kw) tap
    # w2_ref : (9*Cp, Chid)    conv2 weights, row blocks of Cp per (kh, kw) tap
    # rc_ref : (2, Cp, H*W)    precomputed [row, col] index planes (int32)
    # o_ref  : (1, Cout, H*W)  output (residual already included)
    d = dilation
    cout = o_ref.shape[1]
    cp = x_ref.shape[1]                        # padded channel count
    row_idx = rc_ref[0]                        # (cp, H*W) int32
    col_idx = rc_ref[1]

    x8 = x_ref[0].astype(jnp.float32)          # (cp, H*W); rows >= dim are zero

    # ---- conv1: nine reflection-shifted copies of the SMALL input feed ONE
    #      im2col matmul; h is produced directly in clean (Chid, H*W) layout ----
    pieces = []
    for kh in range(3):
        for kw in range(3):
            pieces.append(_reflect_shift(
                x8, d * (kh - 1), d * (kw - 1),
                H=H, W=W, row_idx=row_idx, col_idx=col_idx))
    xcol = jnp.concatenate(pieces, axis=0)                         # (9*cp, H*W)
    h = jnp.maximum(
        jnp.dot(w1_ref[...], xcol, preferred_element_type=jnp.float32), 0.0)

    # ---- conv2: ONE matmul against the UNSHIFTED h; the nine tap shifts and
    #      the 1-pixel reflection border are applied to the tiny partials ----
    part = jnp.dot(w2_ref[...], h, preferred_element_type=jnp.float32)  # (9*cp, H*W)
    acc = x8                                                        # residual
    for kh in range(3):
        for kw in range(3):
            t = kh * 3 + kw
            p = part[t * cp:(t + 1) * cp, :]       # 8-aligned sublane slice
            acc = acc + _reflect_shift(p, kh - 1, kw - 1,
                                       H=H, W=W, row_idx=row_idx, col_idx=col_idx)

    o_ref[0] = acc[:cout, :].astype(o_ref.dtype)


# ------------------------------ Pallas wrapper ------------------------------ #

@functools.partial(jax.jit, static_argnames=("dilation",))
def resnet_block(x_nchw, w1_mat, w2_mat, *, dilation=1):
    """Fused ResnetBlock forward.  x_nchw: (N, dim, H, W); weights from
    prepare_weights()."""
    N, C, H, W = x_nchw.shape
    chid = w1_mat.shape[0]
    cp = w1_mat.shape[1] // 9
    assert w2_mat.shape[0] == 9 * cp and w2_mat.shape[1] == chid

    # lane-dense flat layout + 8-aligned channel pad (free XLA-side plumbing)
    x_flat = x_nchw.reshape(N, C, H * W)
    if cp > C:
        x_flat = jnp.pad(x_flat, ((0, 0), (0, cp - C), (0, 0)))

    # row / col index planes: keeps integer div/mod out of the kernel
    q = jnp.arange(H * W, dtype=jnp.int32)
    rc = jnp.stack([q // W, q % W])                               # (2, H*W)
    rc = jnp.broadcast_to(rc[:, None, :], (2, cp, H * W))

    out_flat = pl.pallas_call(
        functools.partial(_resnet_block_kernel, H=H, W=W, dilation=dilation),
        out_shape=jax.ShapeDtypeStruct((N, C, H * W), x_nchw.dtype),
        grid=(N,),
        in_specs=[
            pl.BlockSpec((1, cp, H * W), lambda n: (n, 0, 0)),
            pl.BlockSpec((chid, 9 * cp), lambda n: (0, 0)),
            pl.BlockSpec((9 * cp, chid), lambda n: (0, 0)),
            pl.BlockSpec((2, cp, H * W), lambda n: (0, 0, 0)),
        ],
        out_specs=pl.BlockSpec((1, C, H * W), lambda n: (n, 0, 0)),
        compiler_params=pltpu.CompilerParams(
            dimension_semantics=("parallel",),       # N shards v7x's two TCs
        ),
    )(x_flat, w1_mat, w2_mat, rc)
    return out_flat.reshape(N, C, H, W)


# --------------------------- parameter glue (JAX) --------------------------- #

def spectral_normalize(w_oihw, n_power_iterations=1, eps=1e-12, seed=42):
    """PyTorch-style spectral norm: weight / sigma, power iteration on
    weight.reshape(out_channels, -1) with a deterministically seeded u."""
    o = w_oihw.shape[0]
    wm = w_oihw.reshape(o, -1)
    u = jax.random.normal(jax.random.PRNGKey(seed), (o,), dtype=w_oihw.dtype)
    u = u / jnp.maximum(jnp.linalg.norm(u), eps)
    v = None
    for _ in range(n_power_iterations):
        v = wm.T @ u
        v = v / jnp.maximum(jnp.linalg.norm(v), eps)
        u = wm @ v
        u = u / jnp.maximum(jnp.linalg.norm(u), eps)
    sigma = u @ (wm @ v)
    return w_oihw / sigma


def prepare_weights(w1_oihw, w2_oihw):
    """Spectral norm + tap-stacked, 8-sublane-padded weight layout (done ONCE
    outside the per-forward hot path)."""
    w1 = spectral_normalize(w1_oihw, seed=42)            # (256, dim, 3, 3)
    w2 = spectral_normalize(w2_oihw, seed=43)            # (dim, 256, 3, 3)
    chid, cin = w1.shape[0], w1.shape[1]
    cout = w2.shape[0]
    cp = _round_up(max(cin, cout), 8)
    # conv1: (O, I, kh, kw) -> (O, kh, kw, Ipad) -> (O, 9*cp); cols (kh, kw, i)
    w1_t = jnp.transpose(w1, (0, 2, 3, 1))
    w1_t = jnp.pad(w1_t, ((0, 0), (0, 0), (0, 0), (0, cp - cin)))
    w1_mat = w1_t.reshape(chid, 9 * cp)
    # conv2: (O, I, kh, kw) -> (kh, kw, Opad, I) -> (9*cp, I); rows (kh, kw, o)
    w2_t = jnp.transpose(w2, (2, 3, 0, 1))
    w2_t = jnp.pad(w2_t, ((0, 0), (0, 0), (0, cp - cout), (0, 0)))
    w2_mat = w2_t.reshape(9 * cp, chid)
    return w1_mat, w2_mat


# ----------------------------- pure-JAX reference ---------------------------- #

def resnet_block_ref(x_nchw, w1_oihw, w2_oihw, *, dilation=1):
    w1 = spectral_normalize(w1_oihw, seed=42)
    w2 = spectral_normalize(w2_oihw, seed=43)
    xp = jnp.pad(x_nchw, ((0, 0), (0, 0), (dilation, dilation), (dilation, dilation)),
                 mode="reflect")
    h = lax.conv_general_dilated(
        xp, w1, window_strides=(1, 1), padding="VALID",
        rhs_dilation=(dilation, dilation),
        dimension_numbers=("NCHW", "OIHW", "NCHW"),
        precision=lax.Precision.HIGHEST)
    h = jnp.maximum(h, 0.0)
    hp = jnp.pad(h, ((0, 0), (0, 0), (1, 1), (1, 1)), mode="reflect")
    y = lax.conv_general_dilated(
        hp, w2, window_strides=(1, 1), padding="VALID",
        dimension_numbers=("NCHW", "OIHW", "NCHW"),
        precision=lax.Precision.HIGHEST)
    return x_nchw + y


# ----------------------------------- main ------------------------------------ #

if __name__ == "__main__":
    dim, hidden = 4, 256
    N, H, W = 2, 16, 16

    key = jax.random.PRNGKey(0)
    kx, kw1, kw2 = jax.random.split(key, 3)
    x = jax.random.normal(kx, (N, dim, H, W), dtype=jnp.float32)
    # Conv2d weights, OIHW, bias=False (use_spectral_norm=True)
    w1 = 0.05 * jax.random.normal(kw1, (hidden, dim, 3, 3), dtype=jnp.float32)
    w2 = 0.05 * jax.random.normal(kw2, (dim, hidden, 3, 3), dtype=jnp.float32)

    # one-time weight prep (spectral norm + tap stacking), outside the hot path
    w1_mat, w2_mat = jax.block_until_ready(prepare_weights(w1, w2))

    for dil in (1, 2):          # d=2 exercises the dilated reflection-pad path
        out = jax.block_until_ready(resnet_block(x, w1_mat, w2_mat, dilation=dil))
        assert out.shape == x.shape and out.dtype == x.dtype
        ref = jax.block_until_ready(resnet_block_ref(x, w1, w2, dilation=dil))
        assert jnp.allclose(out, ref, rtol=2e-3, atol=2e-3), (
            f"mismatch vs JAX reference (dilation={dil})")

    print("KERNEL_OK")
</pallas_src>

<mosaic_0001>
module attributes {stable_mosaic.version = 11 : i64} {
  func.func @_resnet_block_kernel(%arg0: i32, %arg1: memref<1x8x256xf32, #tpu.memory_space<vmem>>, %arg2: memref<256x72xf32, #tpu.memory_space<vmem>>, %arg3: memref<72x256xf32, #tpu.memory_space<vmem>>, %arg4: memref<2x8x256xi32, #tpu.memory_space<vmem>>, %arg5: memref<1x4x256xf32, #tpu.memory_space<vmem>>) attributes {dimension_semantics = [#tpu.dimension_semantics<parallel>], iteration_bounds = array<i64: 2>, scalar_prefetch = 0 : i64, scratch_operands = 0 : i64, tpu.core_type = #tpu.core_type<tc>, window_params = [{transform_indices = @transform_0, window_bounds = array<i64: 1, 8, 256>}, {pipeline_mode = #tpu.pipeline_mode<synchronous>, transform_indices = @transform_1, window_bounds = array<i64: 256, 72>}, {pipeline_mode = #tpu.pipeline_mode<synchronous>, transform_indices = @transform_2, window_bounds = array<i64: 72, 256>}, {pipeline_mode = #tpu.pipeline_mode<synchronous>, transform_indices = @transform_3, window_bounds = array<i64: 2, 8, 256>}, {transform_indices = @transform_4, window_bounds = array<i64: 1, 4, 256>}]} {
    %c0 = arith.constant 0 : index
    %c0_0 = arith.constant 0 : index
    %c0_1 = arith.constant 0 : index
    %0 = vector.load %arg4[%c0, %c0_0, %c0_1] : memref<2x8x256xi32, #tpu.memory_space<vmem>>, vector<1x8x256xi32>
    %1 = vector.shape_cast %0 : vector<1x8x256xi32> to vector<8x256xi32>
    %c1 = arith.constant 1 : index
    %c0_2 = arith.constant 0 : index
    %c0_3 = arith.constant 0 : index
    %2 = vector.load %arg4[%c1, %c0_2, %c0_3] : memref<2x8x256xi32, #tpu.memory_space<vmem>>, vector<1x8x256xi32>
    %3 = vector.shape_cast %2 : vector<1x8x256xi32> to vector<8x256xi32>
    %c0_4 = arith.constant 0 : index
    %c0_5 = arith.constant 0 : index
    %c0_6 = arith.constant 0 : index
    %4 = vector.load %arg1[%c0_4, %c0_5, %c0_6] : memref<1x8x256xf32, #tpu.memory_space<vmem>>, vector<1x8x256xf32>
    %5 = vector.shape_cast %4 : vector<1x8x256xf32> to vector<8x256xf32>
    %6 = vector.extract_strided_slice %5 {offsets = [0, 255], sizes = [8, 1], strides = [1, 1]} : vector<8x256xf32> to vector<8x1xf32>
    %7 = vector.extract_strided_slice %5 {offsets = [0, 0], sizes = [8, 255], strides = [1, 1]} : vector<8x256xf32> to vector<8x255xf32>
    %8 = tpu.concatenate %6, %7 in 1 : vector<8x1xf32>, vector<8x255xf32> -> vector<8x256xf32>
    %9 = vector.extract_strided_slice %5 {offsets = [0, 1], sizes = [8, 255], strides = [1, 1]} : vector<8x256xf32> to vector<8x255xf32>
    %10 = vector.extract_strided_slice %5 {offsets = [0, 0], sizes = [8, 1], strides = [1, 1]} : vector<8x256xf32> to vector<8x1xf32>
    %11 = tpu.concatenate %9, %10 in 1 : vector<8x255xf32>, vector<8x1xf32> -> vector<8x256xf32>
    %c0_i32 = arith.constant 0 : i32
    %12 = vector.broadcast %c0_i32 : i32 to vector<8x256xi32>
    %13 = arith.cmpi eq, %3, %12 : vector<8x256xi32>
    %14 = arith.select %13, %11, %8 : vector<8x256xi1>, vector<8x256xf32>
    %15 = vector.extract_strided_slice %14 {offsets = [0, 240], sizes = [8, 16], strides = [1, 1]} : vector<8x256xf32> to vector<8x16xf32>
    %16 = vector.extract_strided_slice %14 {offsets = [0, 0], sizes = [8, 240], strides = [1, 1]} : vector<8x256xf32> to vector<8x240xf32>
    %17 = tpu.concatenate %15, %16 in 1 : vector<8x16xf32>, vector<8x240xf32> -> vector<8x256xf32>
    %18 = vector.extract_strided_slice %14 {offsets = [0, 16], sizes = [8, 240], strides = [1, 1]} : vector<8x256xf32> to vector<8x240xf32>
    %19 = vector.extract_strided_slice %14 {offsets = [0, 0], sizes = [8, 16], strides = [1, 1]} : vector<8x256xf32> to vector<8x16xf32>
    %20 = tpu.concatenate %18, %19 in 1 : vector<8x240xf32>, vector<8x16xf32> -> vector<8x256xf32>
    %c0_i32_7 = arith.constant 0 : i32
    %21 = vector.broadcast %c0_i32_7 : i32 to vector<8x256xi32>
    %22 = arith.cmpi eq, %1, %21 : vector<8x256xi32>
    %23 = arith.select %22, %20, %17 : vector<8x256xi1>, vector<8x256xf32>
    %24 = vector.extract_strided_slice %5 {offsets = [0, 240], sizes = [8, 16], strides = [1, 1]} : vector<8x256xf32> to vector<8x16xf32>
    %25 = vector.extract_strided_slice %5 {offsets = [0, 0], sizes = [8, 240], strides = [1, 1]} : vector<8x256xf32> to vector<8x240xf32>
    %26 = tpu.concatenate %24, %25 in 1 : vector<8x16xf32>, vector<8x240xf32> -> vector<8x256xf32>
    %27 = vector.extract_strided_slice %5 {offsets = [0, 16], sizes = [8, 240], strides = [1, 1]} : vector<8x256xf32> to vector<8x240xf32>
    %28 = vector.extract_strided_slice %5 {offsets = [0, 0], sizes = [8, 16], strides = [1, 1]} : vector<8x256xf32> to vector<8x16xf32>
    %29 = tpu.concatenate %27, %28 in 1 : vector<8x240xf32>, vector<8x16xf32> -> vector<8x256xf32>
    %c0_i32_8 = arith.constant 0 : i32
    %30 = vector.broadcast %c0_i32_8 : i32 to vector<8x256xi32>
    %31 = arith.cmpi eq, %1, %30 : vector<8x256xi32>
    %32 = arith.select %31, %29, %26 : vector<8x256xi1>, vector<8x256xf32>
    %33 = vector.extract_strided_slice %5 {offsets = [0, 1], sizes = [8, 255], strides = [1, 1]} : vector<8x256xf32> to vector<8x255xf32>
    %34 = vector.extract_strided_slice %5 {offsets = [0, 0], sizes = [8, 1], strides = [1, 1]} : vector<8x256xf32> to vector<8x1xf32>
    %35 = tpu.concatenate %33, %34 in 1 : vector<8x255xf32>, vector<8x1xf32> -> vector<8x256xf32>
    %36 = vector.extract_strided_slice %5 {offsets = [0, 255], sizes = [8, 1], strides = [1, 1]} : vector<8x256xf32> to vector<8x1xf32>
    %37 = vector.extract_strided_slice %5 {offsets = [0, 0], sizes = [8, 255], strides = [1, 1]} : vector<8x256xf32> to vector<8x255xf32>
    %38 = tpu.concatenate %36, %37 in 1 : vector<8x1xf32>, vector<8x255xf32> -> vector<8x256xf32>
    %c15_i32 = arith.constant 15 : i32
    %39 = vector.broadcast %c15_i32 : i32 to vector<8x256xi32>
    %40 = arith.cmpi eq, %3, %39 : vector<8x256xi32>
    %41 = arith.select %40, %38, %35 : vector<8x256xi1>, vector<8x256xf32>
    %42 = vector.extract_strided_slice %41 {offsets = [0, 240], sizes = [8, 16], strides = [1, 1]} : vector<8x256xf32> to vector<8x16xf32>
    %43 = vector.extract_strided_slice %41 {offsets = [0, 0], sizes = [8, 240], strides = [1, 1]} : vector<8x256xf32> to vector<8x240xf32>
    %44 = tpu.concatenate %42, %43 in 1 : vector<8x16xf32>, vector<8x240xf32> -> vector<8x256xf32>
    %45 = vector.extract_strided_slice %41 {offsets = [0, 16], sizes = [8, 240], strides = [1, 1]} : vector<8x256xf32> to vector<8x240xf32>
    %46 = vector.extract_strided_slice %41 {offsets = [0, 0], sizes = [8, 16], strides = [1, 1]} : vector<8x256xf32> to vector<8x16xf32>
    %47 = tpu.concatenate %45, %46 in 1 : vector<8x240xf32>, vector<8x16xf32> -> vector<8x256xf32>
    %c0_i32_9 = arith.constant 0 : i32
    %48 = vector.broadcast %c0_i32_9 : i32 to vector<8x256xi32>
    %49 = arith.cmpi eq, %1, %48 : vector<8x256xi32>
    %50 = arith.select %49, %47, %44 : vector<8x256xi1>, vector<8x256xf32>
    %51 = vector.extract_strided_slice %5 {offsets = [0, 255], sizes = [8, 1], strides = [1, 1]} : vector<8x256xf32> to vector<8x1xf32>
    %52 = vector.extract_strided_slice %5 {offsets = [0, 0], sizes = [8, 255], strides = [1, 1]} : vector<8x256xf32> to vector<8x255xf32>
    %53 = tpu.concatenate %51, %52 in 1 : vector<8x1xf32>, vector<8x255xf32> -> vector<8x256xf32>
    %54 = vector.extract_strided_slice %5 {offsets = [0, 1], sizes = [8, 255], strides = [1, 1]} : vector<8x256xf32> to vector<8x255xf32>
    %55 = vector.extract_strided_slice %5 {offsets = [0, 0], sizes = [8, 1], strides = [1, 1]} : vector<8x256xf32> to vector<8x1xf32>
    %56 = tpu.concatenate %54, %55 in 1 : vector<8x255xf32>, vector<8x1xf32> -> vector<8x256xf32>
    %c0_i32_10 = arith.constant 0 : i32
    %57 = vector.broadcast %c0_i32_10 : i32 to vector<8x256xi32>
    %58 = arith.cmpi eq, %3, %57 : vector<8x256xi32>
    %59 = arith.select %58, %56, %53 : vector<8x256xi1>, vector<8x256xf32>
    %60 = vector.extract_strided_slice %5 {offsets = [0, 1], sizes = [8, 255], strides = [1, 1]} : vector<8x256xf32> to vector<8x255xf32>
    %61 = vector.extract_strided_slice %5 {offsets = [0, 0], sizes = [8, 1], strides = [1, 1]} : vector<8x256xf32> to vector<8x1xf32>
    %62 = tpu.concatenate %60, %61 in 1 : vector<8x255xf32>, vector<8x1xf32> -> vector<8x256xf32>
    %63 = vector.extract_strided_slice %5 {offsets = [0, 255], sizes = [8, 1], strides = [1, 1]} : vector<8x256xf32> to vector<8x1xf32>
    %64 = vector.extract_strided_slice %5 {offsets = [0, 0], sizes = [8, 255], strides = [1, 1]} : vector<8x256xf32> to vector<8x255xf32>
    %65 = tpu.concatenate %63, %64 in 1 : vector<8x1xf32>, vector<8x255xf32> -> vector<8x256xf32>
    %c15_i32_11 = arith.constant 15 : i32
    %66 = vector.broadcast %c15_i32_11 : i32 to vector<8x256xi32>
    %67 = arith.cmpi eq, %3, %66 : vector<8x256xi32>
    %68 = arith.select %67, %65, %62 : vector<8x256xi1>, vector<8x256xf32>
    %69 = vector.extract_strided_slice %5 {offsets = [0, 255], sizes = [8, 1], strides = [1, 1]} : vector<8x256xf32> to vector<8x1xf32>
    %70 = vector.extract_strided_slice %5 {offsets = [0, 0], sizes = [8, 255], strides = [1, 1]} : vector<8x256xf32> to vector<8x255xf32>
    %71 = tpu.concatenate %69, %70 in 1 : vector<8x1xf32>, vector<8x255xf32> -> vector<8x256xf32>
    %72 = vector.extract_strided_slice %5 {offsets = [0, 1], sizes = [8, 255], strides = [1, 1]} : vector<8x256xf32> to vector<8x255xf32>
    %73 = vector.extract_strided_slice %5 {offsets = [0, 0], sizes = [8, 1], strides = [1, 1]} : vector<8x256xf32> to vector<8x1xf32>
    %74 = tpu.concatenate %72, %73 in 1 : vector<8x255xf32>, vector<8x1xf32> -> vector<8x256xf32>
    %c0_i32_12 = arith.constant 0 : i32
    %75 = vector.broadcast %c0_i32_12 : i32 to vector<8x256xi32>
    %76 = arith.cmpi eq, %3, %75 : vector<8x256xi32>
    %77 = arith.select %76, %74, %71 : vector<8x256xi1>, vector<8x256xf32>
    %78 = vector.extract_strided_slice %77 {offsets = [0, 16], sizes = [8, 240], strides = [1, 1]} : vector<8x256xf32> to vector<8x240xf32>
    %79 = vector.extract_strided_slice %77 {offsets = [0, 0], sizes = [8, 16], strides = [1, 1]} : vector<8x256xf32> to vector<8x16xf32>
    %80 = tpu.concatenate %78, %79 in 1 : vector<8x240xf32>, vector<8x16xf32> -> vector<8x256xf32>
    %81 = vector.extract_strided_slice %77 {offsets = [0, 240], sizes = [8, 16], strides = [1, 1]} : vector<8x256xf32> to vector<8x16xf32>
    %82 = vector.extract_strided_slice %77 {offsets = [0, 0], sizes = [8, 240], strides = [1, 1]} : vector<8x256xf32> to vector<8x240xf32>
    %83 = tpu.concatenate %81, %82 in 1 : vector<8x16xf32>, vector<8x240xf32> -> vector<8x256xf32>
    %c15_i32_13 = arith.constant 15 : i32
    %84 = vector.broadcast %c15_i32_13 : i32 to vector<8x256xi32>
    %85 = arith.cmpi eq, %1, %84 : vector<8x256xi32>
    %86 = arith.select %85, %83, %80 : vector<8x256xi1>, vector<8x256xf32>
    %87 = vector.extract_strided_slice %5 {offsets = [0, 16], sizes = [8, 240], strides = [1, 1]} : vector<8x256xf32> to vector<8x240xf32>
    %88 = vector.extract_strided_slice %5 {offsets = [0, 0], sizes = [8, 16], strides = [1, 1]} : vector<8x256xf32> to vector<8x16xf32>
    %89 = tpu.concatenate %87, %88 in 1 : vector<8x240xf32>, vector<8x16xf32> -> vector<8x256xf32>
    %90 = vector.extract_strided_slice %5 {offsets = [0, 240], sizes = [8, 16], strides = [1, 1]} : vector<8x256xf32> to vector<8x16xf32>
    %91 = vector.extract_strided_slice %5 {offsets = [0, 0], sizes = [8, 240], strides = [1, 1]} : vector<8x256xf32> to vector<8x240xf32>
    %92 = tpu.concatenate %90, %91 in 1 : vector<8x16xf32>, vector<8x240xf32> -> vector<8x256xf32>
    %c15_i32_14 = arith.constant 15 : i32
    %93 = vector.broadcast %c15_i32_14 : i32 to vector<8x256xi32>
    %94 = arith.cmpi eq, %1, %93 : vector<8x256xi32>
    %95 = arith.select %94, %92, %89 : vector<8x256xi1>, vector<8x256xf32>
    %96 = vector.extract_strided_slice %5 {offsets = [0, 1], sizes = [8, 255], strides = [1, 1]} : vector<8x256xf32> to vector<8x255xf32>
    %97 = vector.extract_strided_slice %5 {offsets = [0, 0], sizes = [8, 1], strides = [1, 1]} : vector<8x256xf32> to vector<8x1xf32>
    %98 = tpu.concatenate %96, %97 in 1 : vector<8x255xf32>, vector<8x1xf32> -> vector<8x256xf32>
    %99 = vector.extract_strided_slice %5 {offsets = [0, 255], sizes = [8, 1], strides = [1, 1]} : vector<8x256xf32> to vector<8x1xf32>
    %100 = vector.extract_strided_slice %5 {offsets = [0, 0], sizes = [8, 255], strides = [1, 1]} : vector<8x256xf32> to vector<8x255xf32>
    %101 = tpu.concatenate %99, %100 in 1 : vector<8x1xf32>, vector<8x255xf32> -> vector<8x256xf32>
    %c15_i32_15 = arith.constant 15 : i32
    %102 = vector.broadcast %c15_i32_15 : i32 to vector<8x256xi32>
    %103 = arith.cmpi eq, %3, %102 : vector<8x256xi32>
    %104 = arith.select %103, %101, %98 : vector<8x256xi1>, vector<8x256xf32>
    %105 = vector.extract_strided_slice %104 {offsets = [0, 16], sizes = [8, 240], strides = [1, 1]} : vector<8x256xf32> to vector<8x240xf32>
    %106 = vector.extract_strided_slice %104 {offsets = [0, 0], sizes = [8, 16], strides = [1, 1]} : vector<8x256xf32> to vector<8x16xf32>
    %107 = tpu.concatenate %105, %106 in 1 : vector<8x240xf32>, vector<8x16xf32> -> vector<8x256xf32>
    %108 = vector.extract_strided_slice %104 {offsets = [0, 240], sizes = [8, 16], strides = [1, 1]} : vector<8x256xf32> to vector<8x16xf32>
    %109 = vector.extract_strided_slice %104 {offsets = [0, 0], sizes = [8, 240], strides = [1, 1]} : vector<8x256xf32> to vector<8x240xf32>
    %110 = tpu.concatenate %108, %109 in 1 : vector<8x16xf32>, vector<8x240xf32> -> vector<8x256xf32>
    %c15_i32_16 = arith.constant 15 : i32
    %111 = vector.broadcast %c15_i32_16 : i32 to vector<8x256xi32>
    %112 = arith.cmpi eq, %1, %111 : vector<8x256xi32>
    %113 = arith.select %112, %110, %107 : vector<8x256xi1>, vector<8x256xf32>
    %114 = tpu.concatenate %23, %32, %50, %59, %5, %68, %86, %95, %113 in 0 : vector<8x256xf32>, vector<8x256xf32>, vector<8x256xf32>, vector<8x256xf32>, vector<8x256xf32>, vector<8x256xf32>, vector<8x256xf32>, vector<8x256xf32>, vector<8x256xf32> -> vector<72x256xf32>
    %c0_17 = arith.constant 0 : index
    %c0_18 = arith.constant 0 : index
    %115 = vector.load %arg2[%c0_17, %c0_18] : memref<256x72xf32, #tpu.memory_space<vmem>>, vector<256x72xf32>
    %cst = arith.constant dense<0.000000e+00> : vector<256x256xf32>
    %116 = tpu.matmul %115, %114, %cst {dimension_numbers = #tpu.dot_dimension_numbers<[1], [0], [0], [1], [0, 0, 1, 1], [], []>} : vector<256x72xf32>, vector<72x256xf32>, vector<256x256xf32> -> vector<256x256xf32>
    %cst_19 = arith.constant 0.000000e+00 : f32
    %117 = vector.broadcast %cst_19 : f32 to vector<256x256xf32>
    %118 = arith.maximumf %116, %117 : vector<256x256xf32>
    %c0_20 = arith.constant 0 : index
    %c0_21 = arith.constant 0 : index
    %119 = vector.load %arg3[%c0_20, %c0_21] : memref<72x256xf32, #tpu.memory_space<vmem>>, vector<72x256xf32>
    %cst_22 = arith.constant dense<0.000000e+00> : vector<72x256xf32>
    %120 = tpu.matmul %119, %118, %cst_22 {dimension_numbers = #tpu.dot_dimension_numbers<[1], [0], [0], [1], [0, 0, 1, 1], [], []>} : vector<72x256xf32>, vector<256x256xf32>, vector<72x256xf32> -> vector<72x256xf32>
    %121 = vector.extract_strided_slice %120 {offsets = [0, 0], sizes = [8, 256], strides = [1, 1]} : vector<72x256xf32> to vector<8x256xf32>
    %122 = vector.extract_strided_slice %121 {offsets = [0, 255], sizes = [8, 1], strides = [1, 1]} : vector<8x256xf32> to vector<8x1xf32>
    %123 = vector.extract_strided_slice %121 {offsets = [0, 0], sizes = [8, 255], strides = [1, 1]} : vector<8x256xf32> to vector<8x255xf32>
    %124 = tpu.concatenate %122, %123 in 1 : vector<8x1xf32>, vector<8x255xf32> -> vector<8x256xf32>
    %125 = vector.extract_strided_slice %121 {offsets = [0, 1], sizes = [8, 255], strides = [1, 1]} : vector<8x256xf32> to vector<8x255xf32>
    %126 = vector.extract_strided_slice %121 {offsets = [0, 0], sizes = [8, 1], strides = [1, 1]} : vector<8x256xf32> to vector<8x1xf32>
    %127 = tpu.concatenate %125, %126 in 1 : vector<8x255xf32>, vector<8x1xf32> -> vector<8x256xf32>
    %c0_i32_23 = arith.constant 0 : i32
    %128 = vector.broadcast %c0_i32_23 : i32 to vector<8x256xi32>
    %129 = arith.cmpi eq, %3, %128 : vector<8x256xi32>
    %130 = arith.select %129, %127, %124 : vector<8x256xi1>, vector<8x256xf32>
    %131 = vector.extract_strided_slice %130 {offsets = [0, 240], sizes = [8, 16], strides = [1, 1]} : vector<8x256xf32> to vector<8x16xf32>
    %132 = vector.extract_strided_slice %130 {offsets = [0, 0], sizes = [8, 240], strides = [1, 1]} : vector<8x256xf32> to vector<8x240xf32>
    %133 = tpu.concatenate %131, %132 in 1 : vector<8x16xf32>, vector<8x240xf32> -> vector<8x256xf32>
    %134 = vector.extract_strided_slice %130 {offsets = [0, 16], sizes = [8, 240], strides = [1, 1]} : vector<8x256xf32> to vector<8x240xf32>
    %135 = vector.extract_strided_slice %130 {offsets = [0, 0], sizes = [8, 16], strides = [1, 1]} : vector<8x256xf32> to vector<8x16xf32>
    %136 = tpu.concatenate %134, %135 in 1 : vector<8x240xf32>, vector<8x16xf32> -> vector<8x256xf32>
    %c0_i32_24 = arith.constant 0 : i32
    %137 = vector.broadcast %c0_i32_24 : i32 to vector<8x256xi32>
    %138 = arith.cmpi eq, %1, %137 : vector<8x256xi32>
    %139 = arith.select %138, %136, %133 : vector<8x256xi1>, vector<8x256xf32>
    %140 = arith.addf %5, %139 : vector<8x256xf32>
    %141 = vector.extract_strided_slice %120 {offsets = [8, 0], sizes = [8, 256], strides = [1, 1]} : vector<72x256xf32> to vector<8x256xf32>
    %142 = vector.extract_strided_slice %141 {offsets = [0, 240], sizes = [8, 16], strides = [1, 1]} : vector<8x256xf32> to vector<8x16xf32>
    %143 = vector.extract_strided_slice %141 {offsets = [0, 0], sizes = [8, 240], strides = [1, 1]} : vector<8x256xf32> to vector<8x240xf32>
    %144 = tpu.concatenate %142, %143 in 1 : vector<8x16xf32>, vector<8x240xf32> -> vector<8x256xf32>
    %145 = vector.extract_strided_slice %141 {offsets = [0, 16], sizes = [8, 240], strides = [1, 1]} : vector<8x256xf32> to vector<8x240xf32>
    %146 = vector.extract_strided_slice %141 {offsets = [0, 0], sizes = [8, 16], strides = [1, 1]} : vector<8x256xf32> to vector<8x16xf32>
    %147 = tpu.concatenate %145, %146 in 1 : vector<8x240xf32>, vector<8x16xf32> -> vector<8x256xf32>
    %c0_i32_25 = arith.constant 0 : i32
    %148 = vector.broadcast %c0_i32_25 : i32 to vector<8x256xi32>
    %149 = arith.cmpi eq, %1, %148 : vector<8x256xi32>
    %150 = arith.select %149, %147, %144 : vector<8x256xi1>, vector<8x256xf32>
    %151 = arith.addf %140, %150 : vector<8x256xf32>
    %152 = vector.extract_strided_slice %120 {offsets = [16, 0], sizes = [8, 256], strides = [1, 1]} : vector<72x256xf32> to vector<8x256xf32>
    %153 = vector.extract_strided_slice %152 {offsets = [0, 1], sizes = [8, 255], strides = [1, 1]} : vector<8x256xf32> to vector<8x255xf32>
    %154 = vector.extract_strided_slice %152 {offsets = [0, 0], sizes = [8, 1], strides = [1, 1]} : vector<8x256xf32> to vector<8x1xf32>
    %155 = tpu.concatenate %153, %154 in 1 : vector<8x255xf32>, vector<8x1xf32> -> vector<8x256xf32>
    %156 = vector.extract_strided_slice %152 {offsets = [0, 255], sizes = [8, 1], strides = [1, 1]} : vector<8x256xf32> to vector<8x1xf32>
    %157 = vector.extract_strided_slice %152 {offsets = [0, 0], sizes = [8, 255], strides = [1, 1]} : vector<8x256xf32> to vector<8x255xf32>
    %158 = tpu.concatenate %156, %157 in 1 : vector<8x1xf32>, vector<8x255xf32> -> vector<8x256xf32>
    %c15_i32_26 = arith.constant 15 : i32
    %159 = vector.broadcast %c15_i32_26 : i32 to vector<8x256xi32>
    %160 = arith.cmpi eq, %3, %159 : vector<8x256xi32>
    %161 = arith.select %160, %158, %155 : vector<8x256xi1>, vector<8x256xf32>
    %162 = vector.extract_strided_slice %161 {offsets = [0, 240], sizes = [8, 16], strides = [1, 1]} : vector<8x256xf32> to vector<8x16xf32>
    %163 = vector.extract_strided_slice %161 {offsets = [0, 0], sizes = [8, 240], strides = [1, 1]} : vector<8x256xf32> to vector<8x240xf32>
    %164 = tpu.concatenate %162, %163 in 1 : vector<8x16xf32>, vector<8x240xf32> -> vector<8x256xf32>
    %165 = vector.extract_strided_slice %161 {offsets = [0, 16], sizes = [8, 240], strides = [1, 1]} : vector<8x256xf32> to vector<8x240xf32>
    %166 = vector.extract_strided_slice %161 {offsets = [0, 0], sizes = [8, 16], strides = [1, 1]} : vector<8x256xf32> to vector<8x16xf32>
    %167 = tpu.concatenate %165, %166 in 1 : vector<8x240xf32>, vector<8x16xf32> -> vector<8x256xf32>
    %c0_i32_27 = arith.constant 0 : i32
    %168 = vector.broadcast %c0_i32_27 : i32 to vector<8x256xi32>
    %169 = arith.cmpi eq, %1, %168 : vector<8x256xi32>
    %170 = arith.select %169, %167, %164 : vector<8x256xi1>, vector<8x256xf32>
    %171 = arith.addf %151, %170 : vector<8x256xf32>
    %172 = vector.extract_strided_slice %120 {offsets = [24, 0], sizes = [8, 256], strides = [1, 1]} : vector<72x256xf32> to vector<8x256xf32>
    %173 = vector.extract_strided_slice %172 {offsets = [0, 255], sizes = [8, 1], strides = [1, 1]} : vector<8x256xf32> to vector<8x1xf32>
    %174 = vector.extract_strided_slice %172 {offsets = [0, 0], sizes = [8, 255], strides = [1, 1]} : vector<8x256xf32> to vector<8x255xf32>
    %175 = tpu.concatenate %173, %174 in 1 : vector<8x1xf32>, vector<8x255xf32> -> vector<8x256xf32>
    %176 = vector.extract_strided_slice %172 {offsets = [0, 1], sizes = [8, 255], strides = [1, 1]} : vector<8x256xf32> to vector<8x255xf32>
    %177 = vector.extract_strided_slice %172 {offsets = [0, 0], sizes = [8, 1], strides = [1, 1]} : vector<8x256xf32> to vector<8x1xf32>
    %178 = tpu.concatenate %176, %177 in 1 : vector<8x255xf32>, vector<8x1xf32> -> vector<8x256xf32>
    %c0_i32_28 = arith.constant 0 : i32
    %179 = vector.broadcast %c0_i32_28 : i32 to vector<8x256xi32>
    %180 = arith.cmpi eq, %3, %179 : vector<8x256xi32>
    %181 = arith.select %180, %178, %175 : vector<8x256xi1>, vector<8x256xf32>
    %182 = arith.addf %171, %181 : vector<8x256xf32>
    %183 = vector.extract_strided_slice %120 {offsets = [32, 0], sizes = [8, 256], strides = [1, 1]} : vector<72x256xf32> to vector<8x256xf32>
    %184 = arith.addf %182, %183 : vector<8x256xf32>
    %185 = vector.extract_strided_slice %120 {offsets = [40, 0], sizes = [8, 256], strides = [1, 1]} : vector<72x256xf32> to vector<8x256xf32>
    %186 = vector.extract_strided_slice %185 {offsets = [0, 1], sizes = [8, 255], strides = [1, 1]} : vector<8x256xf32> to vector<8x255xf32>
    %187 = vector.extract_strided_slice %185 {offsets = [0, 0], sizes = [8, 1], strides = [1, 1]} : vector<8x256xf32> to vector<8x1xf32>
    %188 = tpu.concatenate %186, %187 in 1 : vector<8x255xf32>, vector<8x1xf32> -> vector<8x256xf32>
    %189 = vector.extract_strided_slice %185 {offsets = [0, 255], sizes = [8, 1], strides = [1, 1]} : vector<8x256xf32> to vector<8x1xf32>
    %190 = vector.extract_strided_slice %185 {offsets = [0, 0], sizes = [8, 255], strides = [1, 1]} : vector<8x256xf32> to vector<8x255xf32>
    %191 = tpu.concatenate %189, %190 in 1 : vector<8x1xf32>, vector<8x255xf32> -> vector<8x256xf32>
    %c15_i32_29 = arith.constant 15 : i32
    %192 = vector.broadcast %c15_i32_29 : i32 to vector<8x256xi32>
    %193 = arith.cmpi eq, %3, %192 : vector<8x256xi32>
    %194 = arith.select %193, %191, %188 : vector<8x256xi1>, vector<8x256xf32>
    %195 = arith.addf %184, %194 : vector<8x256xf32>
    %196 = vector.extract_strided_slice %120 {offsets = [48, 0], sizes = [8, 256], strides = [1, 1]} : vector<72x256xf32> to vector<8x256xf32>
    %197 = vector.extract_strided_slice %196 {offsets = [0, 255], sizes = [8, 1], strides = [1, 1]} : vector<8x256xf32> to vector<8x1xf32>
    %198 = vector.extract_strided_slice %196 {offsets = [0, 0], sizes = [8, 255], strides = [1, 1]} : vector<8x256xf32> to vector<8x255xf32>
    %199 = tpu.concatenate %197, %198 in 1 : vector<8x1xf32>, vector<8x255xf32> -> vector<8x256xf32>
    %200 = vector.extract_strided_slice %196 {offsets = [0, 1], sizes = [8, 255], strides = [1, 1]} : vector<8x256xf32> to vector<8x255xf32>
    %201 = vector.extract_strided_slice %196 {offsets = [0, 0], sizes = [8, 1], strides = [1, 1]} : vector<8x256xf32> to vector<8x1xf32>
    %202 = tpu.concatenate %200, %201 in 1 : vector<8x255xf32>, vector<8x1xf32> -> vector<8x256xf32>
    %c0_i32_30 = arith.constant 0 : i32
    %203 = vector.broadcast %c0_i32_30 : i32 to vector<8x256xi32>
    %204 = arith.cmpi eq, %3, %203 : vector<8x256xi32>
    %205 = arith.select %204, %202, %199 : vector<8x256xi1>, vector<8x256xf32>
    %206 = vector.extract_strided_slice %205 {offsets = [0, 16], sizes = [8, 240], strides = [1, 1]} : vector<8x256xf32> to vector<8x240xf32>
    %207 = vector.extract_strided_slice %205 {offsets = [0, 0], sizes = [8, 16], strides = [1, 1]} : vector<8x256xf32> to vector<8x16xf32>
    %208 = tpu.concatenate %206, %207 in 1 : vector<8x240xf32>, vector<8x16xf32> -> vector<8x256xf32>
    %209 = vector.extract_strided_slice %205 {offsets = [0, 240], sizes = [8, 16], strides = [1, 1]} : vector<8x256xf32> to vector<8x16xf32>
    %210 = vector.extract_strided_slice %205 {offsets = [0, 0], sizes = [8, 240], strides = [1, 1]} : vector<8x256xf32> to vector<8x240xf32>
    %211 = tpu.concatenate %209, %210 in 1 : vector<8x16xf32>, vector<8x240xf32> -> vector<8x256xf32>
    %c15_i32_31 = arith.constant 15 : i32
    %212 = vector.broadcast %c15_i32_31 : i32 to vector<8x256xi32>
    %213 = arith.cmpi eq, %1, %212 : vector<8x256xi32>
    %214 = arith.select %213, %211, %208 : vector<8x256xi1>, vector<8x256xf32>
    %215 = arith.addf %195, %214 : vector<8x256xf32>
    %216 = vector.extract_strided_slice %120 {offsets = [56, 0], sizes = [8, 256], strides = [1, 1]} : vector<72x256xf32> to vector<8x256xf32>
    %217 = vector.extract_strided_slice %216 {offsets = [0, 16], sizes = [8, 240], strides = [1, 1]} : vector<8x256xf32> to vector<8x240xf32>
    %218 = vector.extract_strided_slice %216 {offsets = [0, 0], sizes = [8, 16], strides = [1, 1]} : vector<8x256xf32> to vector<8x16xf32>
    %219 = tpu.concatenate %217, %218 in 1 : vector<8x240xf32>, vector<8x16xf32> -> vector<8x256xf32>
    %220 = vector.extract_strided_slice %216 {offsets = [0, 240], sizes = [8, 16], strides = [1, 1]} : vector<8x256xf32> to vector<8x16xf32>
    %221 = vector.extract_strided_slice %216 {offsets = [0, 0], sizes = [8, 240], strides = [1, 1]} : vector<8x256xf32> to vector<8x240xf32>
    %222 = tpu.concatenate %220, %221 in 1 : vector<8x16xf32>, vector<8x240xf32> -> vector<8x256xf32>
    %c15_i32_32 = arith.constant 15 : i32
    %223 = vector.broadcast %c15_i32_32 : i32 to vector<8x256xi32>
    %224 = arith.cmpi eq, %1, %223 : vector<8x256xi32>
    %225 = arith.select %224, %222, %219 : vector<8x256xi1>, vector<8x256xf32>
    %226 = arith.addf %215, %225 : vector<8x256xf32>
    %227 = vector.extract_strided_slice %120 {offsets = [64, 0], sizes = [8, 256], strides = [1, 1]} : vector<72x256xf32> to vector<8x256xf32>
    %228 = vector.extract_strided_slice %227 {offsets = [0, 1], sizes = [8, 255], strides = [1, 1]} : vector<8x256xf32> to vector<8x255xf32>
    %229 = vector.extract_strided_slice %227 {offsets = [0, 0], sizes = [8, 1], strides = [1, 1]} : vector<8x256xf32> to vector<8x1xf32>
    %230 = tpu.concatenate %228, %229 in 1 : vector<8x255xf32>, vector<8x1xf32> -> vector<8x256xf32>
    %231 = vector.extract_strided_slice %227 {offsets = [0, 255], sizes = [8, 1], strides = [1, 1]} : vector<8x256xf32> to vector<8x1xf32>
    %232 = vector.extract_strided_slice %227 {offsets = [0, 0], sizes = [8, 255], strides = [1, 1]} : vector<8x256xf32> to vector<8x255xf32>
    %233 = tpu.concatenate %231, %232 in 1 : vector<8x1xf32>, vector<8x255xf32> -> vector<8x256xf32>
    %c15_i32_33 = arith.constant 15 : i32
    %234 = vector.broadcast %c15_i32_33 : i32 to vector<8x256xi32>
    %235 = arith.cmpi eq, %3, %234 : vector<8x256xi32>
    %236 = arith.select %235, %233, %230 : vector<8x256xi1>, vector<8x256xf32>
    %237 = vector.extract_strided_slice %236 {offsets = [0, 16], sizes = [8, 240], strides = [1, 1]} : vector<8x256xf32> to vector<8x240xf32>
    %238 = vector.extract_strided_slice %236 {offsets = [0, 0], sizes = [8, 16], strides = [1, 1]} : vector<8x256xf32> to vector<8x16xf32>
    %239 = tpu.concatenate %237, %238 in 1 : vector<8x240xf32>, vector<8x16xf32> -> vector<8x256xf32>
    %240 = vector.extract_strided_slice %236 {offsets = [0, 240], sizes = [8, 16], strides = [1, 1]} : vector<8x256xf32> to vector<8x16xf32>
    %241 = vector.extract_strided_slice %236 {offsets = [0, 0], sizes = [8, 240], strides = [1, 1]} : vector<8x256xf32> to vector<8x240xf32>
    %242 = tpu.concatenate %240, %241 in 1 : vector<8x16xf32>, vector<8x240xf32> -> vector<8x256xf32>
    %c15_i32_34 = arith.constant 15 : i32
    %243 = vector.broadcast %c15_i32_34 : i32 to vector<8x256xi32>
    %244 = arith.cmpi eq, %1, %243 : vector<8x256xi32>
    %245 = arith.select %244, %242, %239 : vector<8x256xi1>, vector<8x256xf32>
    %246 = arith.addf %226, %245 : vector<8x256xf32>
    %247 = vector.extract_strided_slice %246 {offsets = [0, 0], sizes = [4, 256], strides = [1, 1]} : vector<8x256xf32> to vector<4x256xf32>
    %c0_35 = arith.constant 0 : index
    %c0_36 = arith.constant 0 : index
    %c0_37 = arith.constant 0 : index
    %248 = vector.load %arg5[%c0_35, %c0_36, %c0_37] : memref<1x4x256xf32, #tpu.memory_space<vmem>>, vector<1x4x256xf32>
    %249 = vector.shape_cast %248 : vector<1x4x256xf32> to vector<4x256xf32>
    %250 = vector.shape_cast %247 : vector<4x256xf32> to vector<1x4x256xf32>
    tpu.vector_store %arg5[%c0_35, %c0_36, %c0_37], %250 {strides = array<i32>} : memref<1x4x256xf32, #tpu.memory_space<vmem>>, vector<1x4x256xf32>,
    return
  }
  func.func @transform_0(%arg0: i32) -> (i32, i32, i32) {
    %c0_i32 = arith.constant 0 : i32
    %c0_i32_0 = arith.constant 0 : i32
    %c0_i32_1 = arith.constant 0 : i32
    return %arg0, %c0_i32, %c0_i32_0 : i32, i32, i32
  }
  func.func @transform_1(%arg0: i32) -> (i32, i32) {
    %c0_i32 = arith.constant 0 : i32
    %c0_i32_0 = arith.constant 0 : i32
    %c0_i32_1 = arith.constant 0 : i32
    return %c0_i32, %c0_i32_0 : i32, i32
  }
  func.func @transform_2(%arg0: i32) -> (i32, i32) {
    %c0_i32 = arith.constant 0 : i32
    %c0_i32_0 = arith.constant 0 : i32
    %c0_i32_1 = arith.constant 0 : i32
    return %c0_i32, %c0_i32_0 : i32, i32
  }
  func.func @transform_3(%arg0: i32) -> (i32, i32, i32) {
    %c0_i32 = arith.constant 0 : i32
    %c0_i32_0 = arith.constant 0 : i32
    %c0_i32_1 = arith.constant 0 : i32
    %c0_i32_2 = arith.constant 0 : i32
    return %c0_i32, %c0_i32_0, %c0_i32_1 : i32, i32, i32
  }
  func.func @transform_4(%arg0: i32) -> (i32, i32, i32) {
    %c0_i32 = arith.constant 0 : i32
    %c0_i32_0 = arith.constant 0 : i32
    %c0_i32_1 = arith.constant 0 : i32
    return %arg0, %c0_i32, %c0_i32_0 : i32, i32, i32
  }
}

</mosaic_0001>

<bundles_post_ra>
// kernel: resnet_block.1
= control target key start
LH: loop header
LB: loop body
LE: loop exit
PB: predicated region body
PF: predicated region fallthrough
CT: control target
= control target key end

     0   :  { %s1340_s15 = smov 0   ;;  %s1949_s0 = inlined_call_operand.vmem [shape: f32[2,8,256], index: 0, kind: input, shape index: {}]   ;;  %s1950_s1 = inlined_call_operand.vmem [shape: f32[256,72], index: 1, kind: input, shape index: {}]   ;;  %s1951_s2 = inlined_call_operand.vmem [shape: f32[72,256], index: 2, kind: input, shape index: {}]   ;;  %s1952_s3 = inlined_call_operand.vmem [shape: s32[2,8,256], index: 3, kind: input, shape index: {}]   ;;  %s1953_s4 = inlined_call_operand.vmem [shape: f32[2,4,256], index: 4, kind: output, shape index: {}]  }
   0x1 LB: > { %s1240_s16 = sadd.s32 4294967295, %s1308_s15   ;;  %p1244_p0 = scmp.ge.s32.totalorder %s1308_s15, 1  ;;  %s1308_s15 = sphi %s1340_s15, %s14_s15  }
   0x2   : > { %p162_p1 = scmp.lt.s32.totalorder %s1308_s15, 3 }
   0x4   : > { %p163_p2 = pnand %p1244_p0, %p162_p1 }
   0x5   : > { %p188_p3 = scmp.lt.s32.totalorder (!%p163_p2), %s1240_s16, 1  ;;  %s1310_s21 = smov (!%p163_p2), 1  }
   0x6   : > { %166 = sbr.rel (%p163_p2) target bundleno = 1104 (0x450), region = 36  ;;  %s1311_s22 = smov (!%p163_p2), 127  }
   0x7   : > { %s1312_s23 = smov (!%p163_p2), 16   ;;  %s1313_s24 = smov (!%p163_p2), 112  }
   0xb   : > { %s1955_s16 = smov (!%p188_p3, %s1240_s16), 1  ;;  %v1381_v4 = vld [vmem:[%s1952_s3 + $0x10] sm:$0xff]  ;;  %v1386_v5 = vld [vmem:[%s1952_s3 + $0x18] sm:$0xff]  ;;  %vm221_vm0 = vcmask 1039360   ;;  %vm212_vm1 = vcmask 7168   ;;  %v1314_v16 = vmov 0.0  }
   0xc   : > { %s1285_s17 = sshll.u32 %s1955_s16, 4  ;;  %vm277_vm2 = vcmp.eq.s32.totalorder %v1381_v4, 15  ;;  %vm278_vm3 = vcmp.eq.s32.totalorder %v1386_v5, 15  ;;  %vm227_vm4 = vcmp.eq.s32.totalorder %v1381_v4, 0  ;;  %vm228_vm5 = vcmp.eq.s32.totalorder %v1386_v5, 0  ;;  %504 = vmatprep.mubr.f32.mxu0 %v1314_v16  ;;  %v1416_v23 = vld [vmem:[%s1952_s3 + $0x8] sm:$0xff] }
   0xd   : > { %s1354_s20 = scalar_lea.vmem %s1949_s0, %s1285_s17  ;;  %vm238_vm6 = vcmask 130048   ;;  %vm247_vm7 = vcmask 916480   ;;  %v1421_v24 = vld [vmem:[%s1952_s3] sm:$0xff]  ;;  %vm304_vm8 = vcmp.eq.s32.totalorder %v1416_v23, 15  ;;  %vm254_vm10 = vcmp.eq.s32.totalorder %v1416_v23, 0  ;;  %v312_v56 = vld [vmem:[%s1950_s1 + $0x8] sm:$0xff] }
   0xe   : > { %v1357_v0 = vld [vmem:[%s1354_s20 + $0x8] sm:$0xff]  ;;  %v1360_v1 = vld [vmem:[%s1354_s20] sm:$0xff]  ;;  %vm303_vm9 = vcmp.eq.s32.totalorder %v1421_v24, 15  ;;  %vm253_vm11 = vcmp.eq.s32.totalorder %v1421_v24, 0  ;;  %vm343_vm12 = vcmask 588800   ;;  %v313_v57 = vld [vmem:[%s1950_s1 + $0x10] sm:$0xff] }
   0xf   : > { %206 = vrot.lane.b32.xlu0 %v1357_v0, %s1310_s21  ;;  %217 = vrot.lane.b32.xlu1 %v1360_v1, %s1311_s22  ;;  %v311_v54 = vld [vmem:[%s1950_s1] sm:$0xff]  ;;  %v314_v58 = vld [vmem:[%s1950_s1 + $0x18] sm:$0xff] }
  0x10   : > { %v315_v59 = vld [vmem:[%s1950_s1 + $0x20] sm:$0xff]  ;;  %v316_v60 = vld [vmem:[%s1950_s1 + $0x28] sm:$0xff]  ;;  %v317_v61 = vld [vmem:[%s1950_s1 + $0x30] sm:$0xff] }
  0x11   : > { %v318_v62 = vld [vmem:[%s1950_s1 + $0x38] sm:$0xff]  ;;  %v319_v63 = vld [vmem:[%s1950_s1 + $0x40] sm:$0xff] }
  0x13   : > { %219 = vrot.lane.b32.xlu1 %v1357_v0, %s1311_s22  ;;  %210 = vrot.lane.b32.xlu0 %v1360_v1, %s1310_s21 }
  0x17   : > { %260 = vrot.lane.b32.xlu1 %v1360_v1, %s1312_s23  ;;  %257 = vrot.lane.b32.xlu0 %v1357_v0, %s1312_s23 }
  0x1b   : > { %268 = vrot.lane.b32.xlu1 %v1357_v0, %s1313_s24  ;;  %266 = vrot.lane.b32.xlu0 %v1360_v1, %s1313_s24 }
  0x81   : > { %v207_v2 = vpop.permute.xlu0 %206  ;;  %v218_v3 = vpop.permute.xlu1 %217 }
  0x85   : > { %v220_v6 = vpop.permute.xlu1 %219  ;;  %v211_v7 = vpop.permute.xlu0 %210 }
  0x86   : > { %v222_v8 = vsel %vm221_vm0, %v218_v3, %v220_v6  ;;  %v226_v9 = vsel %vm221_vm0, %v220_v6, %v218_v3  ;;  %v213_v10 = vsel %vm212_vm1, %v211_v7, %v207_v2  ;;  %v216_v11 = vsel %vm212_vm1, %v207_v2, %v211_v7  ;;  %v322_v2 = vld [vmem:[%s1950_s1 + $0x58] sm:$0xff]  ;;  %v323_v3 = vld [vmem:[%s1950_s1 + $0x60] sm:$0xff]  ;;  %v324_v6 = vld [vmem:[%s1950_s1 + $0x68] sm:$0xff] }
  0x87   : > { %v279_v12 = vsel %vm277_vm2, %v216_v11, %v222_v8  ;;  %v280_v13 = vsel %vm278_vm3, %v213_v10, %v226_v9  ;;  %v229_v14 = vsel %vm227_vm4, %v222_v8, %v216_v11  ;;  %v230_v15 = vsel %vm228_vm5, %v226_v9, %v213_v10  ;;  %v325_v7 = vld [vmem:[%s1950_s1 + $0x70] sm:$0xff]  ;;  %v326_v8 = vld [vmem:[%s1950_s1 + $0x78] sm:$0xff]  ;;  %v327_v9 = vld [vmem:[%s1950_s1 + $0x80] sm:$0xff] }
  0x88   : > { %286 = vrot.lane.b32.xlu1 %v279_v12, %s1312_s23  ;;  %282 = vrot.lane.b32.xlu0 %v280_v13, %s1312_s23  ;;  %v328_v10 = vld [vmem:[%s1950_s1 + $0x88] sm:$0xff]  ;;  %v329_v11 = vld [vmem:[%s1950_s1 + $0x90] sm:$0xff] }
  0x89   : > { %v261_v17 = vpop.permute.xlu1 %260  ;;  %v258_v18 = vpop.permute.xlu0 %257 }
  0x8a   : > { %v262_v25 = vsel %vm238_vm6, %v261_v17, %v258_v18  ;;  %v265_v33 = vsel %vm238_vm6, %v258_v18, %v261_v17  ;;  %v334_v17 = vld [vmem:[%s1950_s1 + $0xb8] sm:$0xff]  ;;  %v335_v18 = vld [vmem:[%s1950_s1 + $0xc0] sm:$0xff] }
  0x8c   : > { %294 = vrot.lane.b32.xlu1 %v280_v13, %s1313_s24  ;;  %292 = vrot.lane.b32.xlu0 %v279_v12, %s1313_s24 }
  0x8d   : > { %v269_v19 = vpop.permute.xlu1 %268  ;;  %v267_v20 = vpop.permute.xlu0 %266 }
  0x8e   : > { %v274_v26 = vsel %vm247_vm7, %v269_v19, %v267_v20  ;;  %v270_v34 = vsel %vm247_vm7, %v267_v20, %v269_v19  ;;  %v336_v19 = vld [vmem:[%s1950_s1 + $0xc8] sm:$0xff]  ;;  %v337_v20 = vld [vmem:[%s1950_s1 + $0xd0] sm:$0xff] }
  0x8f   : > { %v308_v39 = vsel %vm304_vm8, %v262_v25, %v274_v26  ;;  %v307_v40 = vsel %vm303_vm9, %v265_v33, %v270_v34  ;;  %v276_v51 = vsel %vm254_vm10, %v274_v26, %v262_v25  ;;  %v275_v52 = vsel %vm253_vm11, %v270_v34, %v265_v33  ;;  %v340_v25 = vld [vmem:[%s1950_s1 + $0xe8] sm:$0xff]  ;;  %v341_v26 = vld [vmem:[%s1950_s1 + $0xf0] sm:$0xff] }
  0x90   : > { %236 = vrot.lane.b32.xlu1 %v229_v14, %s1312_s23  ;;  %232 = vrot.lane.b32.xlu0 %v230_v15, %s1312_s23 }
  0x94   : > { %245 = vrot.lane.b32.xlu1 %v230_v15, %s1313_s24  ;;  %243 = vrot.lane.b32.xlu0 %v229_v14, %s1313_s24 }
  0xfa   : > { %v287_v21 = vpop.permute.xlu1 %286  ;;  %v283_v22 = vpop.permute.xlu0 %282 }
  0xfb   : > { %v288_v29 = vsel %vm238_vm6, %v287_v21, %v283_v22  ;;  %v291_v30 = vsel %vm238_vm6, %v283_v22, %v287_v21  ;;  %v338_v21 = vld [vmem:[%s1950_s1 + $0xd8] sm:$0xff]  ;;  %v339_v22 = vld [vmem:[%s1950_s1 + $0xe0] sm:$0xff] }
  0xfe   : > { %v295_v27 = vpop.permute.xlu1 %294  ;;  %v293_v28 = vpop.permute.xlu0 %292 }
  0xff   : > { %v296_v31 = vsel %vm247_vm7, %v293_v28, %v295_v27  ;;  %v300_v32 = vsel %vm247_vm7, %v295_v27, %v293_v28  ;;  %v342_v27 = vld [vmem:[%s1950_s1 + $0xf8] sm:$0xff] }
 0x100   : > { %v310_v35 = vsel %vm304_vm8, %v288_v29, %v300_v32  ;;  %v309_v36 = vsel %vm303_vm9, %v291_v30, %v296_v31  ;;  %v302_v49 = vsel %vm254_vm10, %v300_v32, %v288_v29  ;;  %v301_v50 = vsel %vm253_vm11, %v296_v31, %v291_v30 }
 0x101   : > { %454 = vmatprep.subr.mxu0 %v310_v35 }
 0x102   : > { %v237_v37 = vpop.permute.xlu1 %236  ;;  %455 = vmatpush1.msra.mxu0 %v309_v36  ;;  %v233_v38 = vpop.permute.xlu0 %232 }
 0x103   : > { %456 = vmatprep.subr.mxu0 %v308_v39  ;;  %v239_v43 = vsel %vm238_vm6, %v237_v37, %v233_v38  ;;  %v242_v44 = vsel %vm238_vm6, %v233_v38, %v237_v37 }
 0x104   : > { %457 = vmatpush1.msra.mxu0 %v307_v40 }
 0x106   : > { %v246_v41 = vpop.permute.xlu1 %245  ;;  %v244_v42 = vpop.permute.xlu0 %243 }
 0x107   : > { %v248_v45 = vsel %vm247_vm7, %v244_v42, %v246_v41  ;;  %v252_v46 = vsel %vm247_vm7, %v246_v41, %v244_v42 }
 0x108   : > { %v306_v47 = vsel %vm304_vm8, %v239_v43, %v252_v46  ;;  %v305_v48 = vsel %vm303_vm9, %v242_v44, %v248_v45  ;;  %v256_v53 = vsel %vm254_vm10, %v252_v46, %v239_v43  ;;  %v255_v55 = vsel %vm253_vm11, %v248_v45, %v242_v44  ;;  %v762_v43 = vld [vmem:[%s1951_s2 + $0x8] sm:$0xff] }
 0x109   : > { %458 = vmatprep.subr.mxu0 %v306_v47  ;;  %843 = vmatprep.mubr.f32.mxu1 %v762_v43 }
 0x10a   : > { %459 = vmatpush1.msra.mxu0 %v305_v48 }
 0x10b   : > { %460 = vmatprep.subr.mxu0 %v280_v13  ;;  %v331_v13 = vld [vmem:[%s1950_s1 + $0xa0] sm:$0xff] }
 0x10c   : > { %461 = vmatpush1.msra.mxu0 %v279_v12  ;;  %v330_v12 = vld [vmem:[%s1950_s1 + $0x98] sm:$0xff] }
 0x10d   : > { %462 = vmatprep.subr.mxu0 %v1357_v0  ;;  %v320_v0 = vld [vmem:[%s1950_s1 + $0x48] sm:$0xff] }
 0x10e   : > { %463 = vmatpush1.msra.mxu0 %v1360_v1  ;;  %v321_v1 = vld [vmem:[%s1950_s1 + $0x50] sm:$0xff] }
 0x10f   : > { %464 = vmatprep.subr.mxu0 %v230_v15  ;;  %v333_v15 = vld [vmem:[%s1950_s1 + $0xb0] sm:$0xff] }
 0x110   : > { %465 = vmatpush1.msra.mxu0 %v229_v14  ;;  %v332_v14 = vld [vmem:[%s1950_s1 + $0xa8] sm:$0xff] }
 0x111   : > { %466 = vmatprep.subr.mxu0 %v302_v49 }
 0x112   : > { %467 = vmatpush1.msra.mxu0 %v301_v50 }
 0x113   : > { %468 = vmatprep.subr.mxu0 %v276_v51 }
 0x114   : > { %469 = vmatpush1.msra.mxu0 %v275_v52 }
 0x115   : > { %470 = vmatprep.subr.mxu0 %v256_v53 }
 0x116   : > { %471 = vmatpush1.msra.mxu0 %v255_v55 }
 0x117   : > { %1251 = vmatmul.mubr.msk.f32.vlgmr.msra.gmra.mxu0 %vm343_vm12, %v311_v54 }
 0x118   : > { %510 = vmatprep.mubr.f32.mxu0 %v1314_v16 }
 0x11b   : > { %1252 = vmatmul.mubr.msk.f32.gmra.mxu0 %vm343_vm12, %v312_v56 }
 0x11c   : > { %516 = vmatprep.mubr.f32.mxu0 %v1314_v16 }
 0x11f   : > { %1253 = vmatmul.mubr.msk.f32.gmra.mxu0 %vm343_vm12, %v313_v57 }
 0x120   : > { %522 = vmatprep.mubr.f32.mxu0 %v1314_v16 }
 0x123   : > { %1254 = vmatmul.mubr.msk.f32.gmra.mxu0 %vm343_vm12, %v314_v58 }
 0x124   : > { %528 = vmatprep.mubr.f32.mxu0 %v1314_v16 }
 0x127   : > { %1255 = vmatmul.mubr.msk.f32.gmra.mxu0 %vm343_vm12, %v315_v59 }
 0x128   : > { %534 = vmatprep.mubr.f32.mxu0 %v1314_v16 }
 0x12b   : > { %1256 = vmatmul.mubr.msk.f32.gmra.mxu0 %vm343_vm12, %v316_v60 }
 0x12c   : > { %540 = vmatprep.mubr.f32.mxu0 %v1314_v16 }
 0x12f   : > { %1257 = vmatmul.mubr.msk.f32.gmra.mxu0 %vm343_vm12, %v317_v61 }
 0x130   : > { %546 = vmatprep.mubr.f32.mxu0 %v1314_v16 }
 0x133   : > { %1258 = vmatmul.mubr.msk.f32.gmra.mxu0 %vm343_vm12, %v318_v62 }
 0x134   : > { %552 = vmatprep.mubr.f32.mxu0 %v1314_v16 }
 0x137   : > { %1259 = vmatmul.mubr.msk.f32.gmra.mxu0 %vm343_vm12, %v319_v63 }
 0x138   : > { %558 = vmatprep.mubr.f32.mxu0 %v1314_v16 }
 0x13b   : > { %1260 = vmatmul.mubr.msk.f32.gmra.mxu0 %vm343_vm12, %v320_v0 }
 0x13c   : > { %564 = vmatprep.mubr.f32.mxu0 %v1314_v16 }
 0x13f   : > { %1261 = vmatmul.mubr.msk.f32.gmra.mxu0 %vm343_vm12, %v321_v1 }
 0x140   : > { %570 = vmatprep.mubr.f32.mxu0 %v1314_v16 }
 0x143   : > { %1262 = vmatmul.mubr.msk.f32.gmra.mxu0 %vm343_vm12, %v322_v2 }
 0x144   : > { %576 = vmatprep.mubr.f32.mxu0 %v1314_v16 }
 0x147   : > { %1263 = vmatmul.mubr.msk.f32.gmra.mxu0 %vm343_vm12, %v323_v3 }
 0x148   : > { %582 = vmatprep.mubr.f32.mxu0 %v1314_v16 }
 0x14b   : > { %1264 = vmatmul.mubr.msk.f32.gmra.mxu0 %vm343_vm12, %v324_v6 }
 0x14c   : > { %588 = vmatprep.mubr.f32.mxu0 %v1314_v16 }
 0x14f   : > { %1265 = vmatmul.mubr.msk.f32.gmra.mxu0 %vm343_vm12, %v325_v7 }
 0x150   : > { %594 = vmatprep.mubr.f32.mxu0 %v1314_v16 }
 0x153   : > { %1266 = vmatmul.mubr.msk.f32.gmra.mxu0 %vm343_vm12, %v326_v8 }
 0x154   : > { %600 = vmatprep.mubr.f32.mxu0 %v1314_v16 }
 0x157   : > { %1267 = vmatmul.mubr.msk.f32.gmra.mxu0 %vm343_vm12, %v327_v9 }
 0x158   : > { %606 = vmatprep.mubr.f32.mxu0 %v1314_v16 }
 0x15b   : > { %1268 = vmatmul.mubr.msk.f32.gmra.mxu0 %vm343_vm12, %v328_v10 }
 0x15c   : > { %612 = vmatprep.mubr.f32.mxu0 %v1314_v16 }
 0x15f   : > { %1269 = vmatmul.mubr.msk.f32.gmra.mxu0 %vm343_vm12, %v329_v11 }
 0x160   : > { %618 = vmatprep.mubr.f32.mxu0 %v1314_v16 }
 0x163   : > { %1270 = vmatmul.mubr.msk.f32.gmra.mxu0 %vm343_vm12, %v330_v12 }
 0x164   : > { %624 = vmatprep.mubr.f32.mxu0 %v1314_v16 }
 0x167   : > { %1271 = vmatmul.mubr.msk.f32.gmra.mxu0 %vm343_vm12, %v331_v13 }
 0x168   : > { %630 = vmatprep.mubr.f32.mxu0 %v1314_v16 }
 0x16b   : > { %1272 = vmatmul.mubr.msk.f32.gmra.mxu0 %vm343_vm12, %v332_v14 }
 0x16c   : > { %636 = vmatprep.mubr.f32.mxu0 %v1314_v16 }
 0x16f   : > { %1273 = vmatmul.mubr.msk.f32.gmra.mxu0 %vm343_vm12, %v333_v15 }
 0x170   : > { %642 = vmatprep.mubr.f32.mxu0 %v1314_v16 }
 0x173   : > { %1274 = vmatmul.mubr.msk.f32.gmra.mxu0 %vm343_vm12, %v334_v17 }
 0x174   : > { %648 = vmatprep.mubr.f32.mxu0 %v1314_v16 }
 0x177   : > { %1275 = vmatmul.mubr.msk.f32.gmra.mxu0 %vm343_vm12, %v335_v18 }
 0x178   : > { %654 = vmatprep.mubr.f32.mxu0 %v1314_v16 }
 0x17b   : > { %1276 = vmatmul.mubr.msk.f32.gmra.mxu0 %vm343_vm12, %v336_v19 }
 0x17c   : > { %660 = vmatprep.mubr.f32.mxu0 %v1314_v16 }
 0x17f   : > { %1277 = vmatmul.mubr.msk.f32.gmra.mxu0 %vm343_vm12, %v337_v20 }
 0x180   : > { %666 = vmatprep.mubr.f32.mxu0 %v1314_v16 }
 0x183   : > { %1278 = vmatmul.mubr.msk.f32.gmra.mxu0 %vm343_vm12, %v338_v21 }
 0x184   : > { %672 = vmatprep.mubr.f32.mxu0 %v1314_v16 }
 0x187   : > { %1279 = vmatmul.mubr.msk.f32.gmra.mxu0 %vm343_vm12, %v339_v22 }
 0x188   : > { %678 = vmatprep.mubr.f32.mxu0 %v1314_v16 }
 0x18b   : > { %1280 = vmatmul.mubr.msk.f32.gmra.mxu0 %vm343_vm12, %v340_v25 }
 0x18c   : > { %684 = vmatprep.mubr.f32.mxu0 %v1314_v16 }
 0x18f   : > { %1281 = vmatmul.mubr.msk.f32.gmra.mxu0 %vm343_vm12, %v341_v26 }
 0x190   : > { %690 = vmatprep.mubr.f32.mxu0 %v1314_v16 }
 0x193   : > { %1282 = vmatmul.mubr.msk.f32.gmra.mxu0 %vm343_vm12, %v342_v27 }
 0x1d7   : > { %v1624_v28 = vpop.f32.mrf.mxu0 }
 0x1d9   : > { %v1626_v29 = vpop.f32.mrf.mxu0 }
 0x1db   : > { %v1628_v30 = vpop.f32.mrf.mxu0 }
 0x1dd   : > { %v1630_v31 = vpop.f32.mrf.mxu0 }
 0x1df   : > { %v1632_v32 = vpop.f32.mrf.mxu0 }
 0x1e1   : > { %v1634_v33 = vpop.f32.mrf.mxu0 }
 0x1e3   : > { %v1636_v34 = vpop.f32.mrf.mxu0 }
 0x1e5   : > { %v1638_v16 = vpop.f32.mrf.mxu0 }
 0x1e7   : > { %v1640_v35 = vpop.f32.mrf.mxu0 }
 0x1e9   : > { %v1642_v36 = vpop.f32.mrf.mxu0 }
 0x1eb   : > { %v1644_v37 = vpop.f32.mrf.mxu0 }
 0x1ed   : > { %v1646_v38 = vpop.f32.mrf.mxu0 }
 0x1ef   : > { %v1648_v39 = vpop.f32.mrf.mxu0 }
 0x1f1   : > { %v1650_v40 = vpop.f32.mrf.mxu0 }
 0x1f2   : > { %v710_v43 = vmax.f32 %v1650_v40, 0.0 }
 0x1f3   : > { %v1652_v41 = vpop.f32.mrf.mxu0 }
 0x1f4   : > { %v711_v26 = vmax.f32 %v1652_v41, 0.0  ;;  %v706_v41 = vmax.f32 %v1642_v36, 0.0 }
 0x1f5   : > { %v1654_v42 = vpop.f32.mrf.mxu0 }
 0x1f6   : > { %v712_v25 = vmax.f32 %v1654_v42, 0.0 }
 0x1f7   : > { %v554_v44 = vpop.f32.mrf.mxu0 }
 0x1f8   : > { %v713_v21 = vmax.f32 %v554_v44, 0.0  ;;  %v708_v44 = vmax.f32 %v1646_v38, 0.0 }
 0x1f9   : > { %v556_v45 = vpop.f32.mrf.mxu0 }
 0x1fa   : > { %v714_v20 = vmax.f32 %v556_v45, 0.0  ;;  %v707_v45 = vmax.f32 %v1644_v37, 0.0  ;;  %v702_v37 = vmax.f32 %v1634_v33, 0.0 }
 0x1fb   : > { %v560_v46 = vpop.f32.mrf.mxu0 }
 0x1fc   : > { %v715_v18 = vmax.f32 %v560_v46, 0.0  ;;  %v709_v46 = vmax.f32 %v1648_v39, 0.0  ;;  %v704_v39 = vmax.f32 %v1638_v16, 0.0 }
 0x1fd   : > { %v562_v47 = vpop.f32.mrf.mxu0 }
 0x1fe   : > { %v716_v17 = vmax.f32 %v562_v47, 0.0 }
 0x1ff   : > { %v566_v48 = vpop.f32.mrf.mxu0 }
 0x200   : > { %v717_v14 = vmax.f32 %v566_v48, 0.0  ;;  %v705_v48 = vmax.f32 %v1640_v35, 0.0  ;;  %v700_v35 = vmax.f32 %v1630_v31, 0.0 }
 0x201   : > { %v568_v49 = vpop.f32.mrf.mxu0 }
 0x202   : > { %v718_v13 = vmax.f32 %v568_v49, 0.0  ;;  %v703_v49 = vmax.f32 %v1636_v34, 0.0  ;;  %v698_v34 = vmax.f32 %v1626_v29, 0.0 }
 0x203   : > { %v572_v50 = vpop.f32.mrf.mxu0 }
 0x204   : > { %v719_v11 = vmax.f32 %v572_v50, 0.0  ;;  %v701_v50 = vmax.f32 %v1632_v32, 0.0 }
 0x205   : > { %v574_v51 = vpop.f32.mrf.mxu0 }
 0x206   : > { %v720_v10 = vmax.f32 %v574_v51, 0.0  ;;  %v699_v51 = vmax.f32 %v1628_v30, 0.0 }
 0x207   : > { %v578_v52 = vpop.f32.mrf.mxu0 }
 0x208   : > { %v721_v8 = vmax.f32 %v578_v52, 0.0  ;;  %v697_v52 = vmax.f32 %v1624_v28, 0.0 }
 0x209   : > { %v580_v53 = vpop.f32.mrf.mxu0 }
 0x20a   : > { %v722_v7 = vmax.f32 %v580_v53, 0.0 }
 0x20b   : > { %v584_v54 = vpop.f32.mrf.mxu0 }
 0x20c   : > { %v723_v3 = vmax.f32 %v584_v54, 0.0 }
 0x20d   : > { %v586_v55 = vpop.f32.mrf.mxu0 }
 0x20e   : > { %v724_v2 = vmax.f32 %v586_v55, 0.0 }
 0x20f   : > { %v590_v56 = vpop.f32.mrf.mxu0 }
 0x210   : > { %v725_v0 = vmax.f32 %v590_v56, 0.0 }
 0x211   : > { %v592_v57 = vpop.f32.mrf.mxu0 }
 0x212   : > { %v726_v63 = vmax.f32 %v592_v57, 0.0 }
 0x213   : > { %v596_v58 = vpop.f32.mrf.mxu0 }
 0x214   : > { %v727_v61 = vmax.f32 %v596_v58, 0.0 }
 0x215   : > { %v598_v59 = vpop.f32.mrf.mxu0 }
 0x216   : > { %v728_v60 = vmax.f32 %v598_v59, 0.0 }
 0x217   : > { %v1659_v62 = vpop.f32.mrf.mxu0 }
 0x218   : > { %779 = vmatprep.subr.mxu1 %v728_v60 }
 0x219   : > { %v1661_v1 = vpop.f32.mrf.mxu0  ;;  %780 = vmatpush1.msra.mxu1 %v727_v61 }
 0x21a   : > { %781 = vmatprep.subr.mxu1 %v726_v63 }
 0x21b   : > { %v1663_v6 = vpop.f32.mrf.mxu0  ;;  %782 = vmatpush1.msra.mxu1 %v725_v0 }
 0x21c   : > { %783 = vmatprep.subr.mxu1 %v724_v2 }
 0x21d   : > { %v1665_v9 = vpop.f32.mrf.mxu0  ;;  %784 = vmatpush1.msra.mxu1 %v723_v3 }
 0x21e   : > { %785 = vmatprep.subr.mxu1 %v722_v7 }
 0x21f   : > { %v1667_v12 = vpop.f32.mrf.mxu0  ;;  %786 = vmatpush1.msra.mxu1 %v721_v8 }
 0x220   : > { %787 = vmatprep.subr.mxu1 %v720_v10 }
 0x221   : > { %v1669_v15 = vpop.f32.mrf.mxu0  ;;  %788 = vmatpush1.msra.mxu1 %v719_v11 }
 0x222   : > { %789 = vmatprep.subr.mxu1 %v718_v13 }
 0x223   : > { %v1671_v19 = vpop.f32.mrf.mxu0  ;;  %790 = vmatpush1.msra.mxu1 %v717_v14 }
 0x224   : > { %791 = vmatprep.subr.mxu1 %v716_v17 }
 0x225   : > { %v1673_v22 = vpop.f32.mrf.mxu0  ;;  %792 = vmatpush1.msra.mxu1 %v715_v18 }
 0x226   : > { %793 = vmatprep.subr.mxu1 %v714_v20 }
 0x227   : > { %v1677_v27 = vpop.f32.mrf.mxu0  ;;  %794 = vmatpush1.msra.mxu1 %v713_v21 }
 0x228   : > { %795 = vmatprep.subr.mxu1 %v712_v25 }
 0x229   : > { %v1681_v47 = vpop.f32.mrf.mxu0  ;;  %796 = vmatpush1.msra.mxu1 %v711_v26 }
 0x22a   : > { %797 = vmatprep.subr.mxu1 %v710_v43 }
 0x22b   : > { %v1685_v42 = vpop.f32.mrf.mxu0  ;;  %798 = vmatpush1.msra.mxu1 %v709_v46 }
 0x22c   : > { %799 = vmatprep.subr.mxu1 %v708_v44 }
 0x22d   : > { %v1689_v40 = vpop.f32.mrf.mxu0  ;;  %800 = vmatpush1.msra.mxu1 %v707_v45 }
 0x22e   : > { %801 = vmatprep.subr.mxu1 %v706_v41 }
 0x22f   : > { %v1693_v38 = vpop.f32.mrf.mxu0  ;;  %802 = vmatpush1.msra.mxu1 %v705_v48 }
 0x230   : > { %803 = vmatprep.subr.mxu1 %v704_v39  ;;  %v741_v48 = vmax.f32 %v1693_v38, 0.0  ;;  %v740_v39 = vmax.f32 %v1689_v40, 0.0  ;;  %v734_v38 = vmax.f32 %v1669_v15, 0.0  ;;  %v733_v40 = vmax.f32 %v1667_v12, 0.0  ;;  %v761_v15 = vld [vmem:[%s1951_s2] sm:$0xff]  ;;  %v764_v12 = vld [vmem:[%s1951_s2 + $0x18] sm:$0xff] }
 0x231   : > { %v1697_v36 = vpop.f32.mrf.mxu0  ;;  %804 = vmatpush1.msra.mxu1 %v703_v49  ;;  %v739_v49 = vmax.f32 %v1685_v42, 0.0  ;;  %v732_v42 = vmax.f32 %v1665_v9, 0.0  ;;  %v768_v9 = vld [vmem:[%s1951_s2 + $0x38] sm:$0xff] }
 0x232   : > { %805 = vmatprep.subr.mxu1 %v702_v37  ;;  %v742_v41 = vmax.f32 %v1697_v36, 0.0  ;;  %v738_v37 = vmax.f32 %v1681_v47, 0.0  ;;  %v735_v36 = vmax.f32 %v1671_v19, 0.0  ;;  %v731_v47 = vmax.f32 %v1663_v6, 0.0  ;;  %v765_v6 = vld [vmem:[%s1951_s2 + $0x20] sm:$0xff]  ;;  %v767_v19 = vld [vmem:[%s1951_s2 + $0x30] sm:$0xff] }
 0x233   : > { %v644_v16 = vpop.f32.mrf.mxu0  ;;  %806 = vmatpush1.msra.mxu1 %v701_v50  ;;  %v737_v50 = vmax.f32 %v1677_v27, 0.0  ;;  %v730_v27 = vmax.f32 %v1661_v1, 0.0  ;;  %v763_v1 = vld [vmem:[%s1951_s2 + $0x10] sm:$0xff] }
 0x234   : > { %807 = vmatprep.subr.mxu1 %v700_v35  ;;  %v743_v45 = vmax.f32 %v644_v16, 0.0  ;;  %v736_v35 = vmax.f32 %v1673_v22, 0.0  ;;  %v729_v22 = vmax.f32 %v1659_v62, 0.0  ;;  %v766_v62 = vld [vmem:[%s1951_s2 + $0x28] sm:$0xff]  ;;  %v769_v16 = vld [vmem:[%s1951_s2 + $0x40] sm:$0xff] }
 0x235   : > { %v646_v53 = vpop.f32.mrf.mxu0  ;;  %808 = vmatpush1.msra.mxu1 %v699_v51  ;;  %v770_v51 = vld [vmem:[%s1951_s2 + $0x48] sm:$0xff] }
 0x236   : > { %809 = vmatprep.subr.mxu1 %v698_v34  ;;  %v744_v44 = vmax.f32 %v646_v53, 0.0  ;;  %v772_v34 = vld [vmem:[%s1951_s2 + $0x58] sm:$0xff]  ;;  %v774_v53 = vld [vmem:[%s1951_s2 + $0x68] sm:$0xff] }
 0x237   : > { %v650_v33 = vpop.f32.mrf.mxu0  ;;  %810 = vmatpush1.msra.mxu1 %v697_v52  ;;  %v771_v52 = vld [vmem:[%s1951_s2 + $0x50] sm:$0xff] }
 0x238   : > { %v745_v46 = vmax.f32 %v650_v33, 0.0  ;;  %v773_v33 = vld [vmem:[%s1951_s2 + $0x60] sm:$0xff] }
 0x239   : > { %v652_v32 = vpop.f32.mrf.mxu0 }
 0x23a   : > { %v746_v43 = vmax.f32 %v652_v32, 0.0  ;;  %v776_v32 = vld [vmem:[%s1951_s2 + $0x78] sm:$0xff] }
 0x23b   : > { %v656_v54 = vpop.f32.mrf.mxu0 }
 0x23c   : > { %v747_v26 = vmax.f32 %v656_v54, 0.0  ;;  %v775_v54 = vld [vmem:[%s1951_s2 + $0x70] sm:$0xff] }
 0x23d   : > { %v658_v55 = vpop.f32.mrf.mxu0 }
 0x23e   : > { %v748_v25 = vmax.f32 %v658_v55, 0.0  ;;  %v778_v55 = vld [vmem:[%s1951_s2 + $0x88] sm:$0xff] }
 0x23f   : > { %v662_v56 = vpop.f32.mrf.mxu0 }
 0x240   : > { %v749_v21 = vmax.f32 %v662_v56, 0.0  ;;  %v777_v56 = vld [vmem:[%s1951_s2 + $0x80] sm:$0xff] }
 0x241   : > { %v664_v31 = vpop.f32.mrf.mxu0 }
 0x242   : > { %v750_v20 = vmax.f32 %v664_v31, 0.0 }
 0x243   : > { %v668_v57 = vpop.f32.mrf.mxu0 }
 0x244   : > { %v751_v18 = vmax.f32 %v668_v57, 0.0 }
 0x245   : > { %v670_v58 = vpop.f32.mrf.mxu0 }
 0x246   : > { %v752_v17 = vmax.f32 %v670_v58, 0.0 }
 0x247   : > { %v674_v30 = vpop.f32.mrf.mxu0 }
 0x248   : > { %v753_v14 = vmax.f32 %v674_v30, 0.0 }
 0x249   : > { %v676_v59 = vpop.f32.mrf.mxu0 }
 0x24a   : > { %v754_v13 = vmax.f32 %v676_v59, 0.0 }
 0x24b   : > { %v680_v60 = vpop.f32.mrf.mxu0 }
 0x24c   : > { %v755_v11 = vmax.f32 %v680_v60, 0.0 }
 0x24d   : > { %v682_v61 = vpop.f32.mrf.mxu0 }
 0x24e   : > { %v756_v10 = vmax.f32 %v682_v61, 0.0 }
 0x24f   : > { %v686_v29 = vpop.f32.mrf.mxu0 }
 0x250   : > { %v757_v8 = vmax.f32 %v686_v29, 0.0 }
 0x251   : > { %v688_v63 = vpop.f32.mrf.mxu0 }
 0x252   : > { %v758_v7 = vmax.f32 %v688_v63, 0.0 }
 0x253   : > { %v692_v0 = vpop.f32.mrf.mxu0 }
 0x254   : > { %v759_v3 = vmax.f32 %v692_v0, 0.0 }
 0x255   : > { %v694_v28 = vpop.f32.mrf.mxu0 }
 0x256   : > { %v760_v2 = vmax.f32 %v694_v28, 0.0 }
 0x258   : > { %811 = vmatprep.subr.mxu1 %v760_v2 }
 0x259   : > { %812 = vmatpush2.msra.mxu1 %v759_v3 }
 0x25a   : > { %813 = vmatprep.subr.mxu1 %v758_v7 }
 0x25b   : > { %814 = vmatpush2.msra.mxu1 %v757_v8 }
 0x25c   : > { %815 = vmatprep.subr.mxu1 %v756_v10 }
 0x25d   : > { %816 = vmatpush2.msra.mxu1 %v755_v11 }
 0x25e   : > { %817 = vmatprep.subr.mxu1 %v754_v13 }
 0x25f   : > { %818 = vmatpush2.msra.mxu1 %v753_v14 }
 0x260   : > { %819 = vmatprep.subr.mxu1 %v752_v17 }
 0x261   : > { %820 = vmatpush2.msra.mxu1 %v751_v18 }
 0x262   : > { %821 = vmatprep.subr.mxu1 %v750_v20 }
 0x263   : > { %822 = vmatpush2.msra.mxu1 %v749_v21 }
 0x264   : > { %823 = vmatprep.subr.mxu1 %v748_v25 }
 0x265   : > { %824 = vmatpush2.msra.mxu1 %v747_v26 }
 0x266   : > { %825 = vmatprep.subr.mxu1 %v746_v43 }
 0x267   : > { %826 = vmatpush2.msra.mxu1 %v745_v46 }
 0x268   : > { %827 = vmatprep.subr.mxu1 %v744_v44 }
 0x269   : > { %828 = vmatpush2.msra.mxu1 %v743_v45 }
 0x26a   : > { %829 = vmatprep.subr.mxu1 %v742_v41 }
 0x26b   : > { %830 = vmatpush2.msra.mxu1 %v741_v48 }
 0x26c   : > { %831 = vmatprep.subr.mxu1 %v740_v39 }
 0x26d   : > { %832 = vmatpush2.msra.mxu1 %v739_v49 }
 0x26e   : > { %833 = vmatprep.subr.mxu1 %v738_v37 }
 0x26f   : > { %834 = vmatpush2.msra.mxu1 %v737_v50 }
 0x270   : > { %835 = vmatprep.subr.mxu1 %v736_v35 }
 0x271   : > { %836 = vmatpush2.msra.mxu1 %v735_v36 }
 0x272   : > { %837 = vmatprep.subr.mxu1 %v734_v38 }
 0x273   : > { %838 = vmatpush2.msra.mxu1 %v733_v40 }
 0x274   : > { %839 = vmatprep.subr.mxu1 %v732_v42 }
 0x275   : > { %840 = vmatpush2.msra.mxu1 %v731_v47 }
 0x276   : > { %841 = vmatprep.subr.mxu1 %v730_v27 }
 0x277   : > { %842 = vmatpush2.msra.mxu1 %v729_v22 }
 0x278   : > { %844 = vmatmul.mubr.f32.vlgmr.msra.gmra.mxu1 %v761_v15 }
 0x279   : > { %849 = vmatprep.mubr.f32.mxu1 %v764_v12 }
 0x27c   : > { %850 = vmatmul.mubr.f32.gmra.mxu1 %v763_v1 }
 0x27d   : > { %855 = vmatprep.mubr.f32.mxu1 %v766_v62 }
 0x280   : > { %856 = vmatmul.mubr.f32.gmra.mxu1 %v765_v6 }
 0x281   : > { %861 = vmatprep.mubr.f32.mxu1 %v768_v9 }
 0x284   : > { %862 = vmatmul.mubr.f32.gmra.mxu1 %v767_v19 }
 0x285   : > { %867 = vmatprep.mubr.f32.mxu1 %v770_v51 }
 0x288   : > { %868 = vmatmul.mubr.f32.gmra.mxu1 %v769_v16 }
 0x289   : > { %873 = vmatprep.mubr.f32.mxu1 %v772_v34 }
 0x28c   : > { %874 = vmatmul.mubr.f32.gmra.mxu1 %v771_v52 }
 0x28d   : > { %879 = vmatprep.mubr.f32.mxu1 %v774_v53 }
 0x290   : > { %880 = vmatmul.mubr.f32.gmra.mxu1 %v773_v33 }
 0x291   : > { %885 = vmatprep.mubr.f32.mxu1 %v776_v32 }
 0x294   : > { %886 = vmatmul.mubr.f32.gmra.mxu1 %v775_v54 }
 0x295   : > { %891 = vmatprep.mubr.f32.mxu1 %v778_v55 }
 0x298   : > { %892 = vmatmul.mubr.f32.gmra.mxu1 %v777_v56 }
 0x338   : > { %v845_v31 = vpop.f32.mrf.mxu1 }
 0x339   : > { %909 = vrot.lane.b32.xlu0 %v845_v31, %s1311_s22  ;;  %903 = vrot.lane.b32.xlu1 %v845_v31, %s1310_s21 }
 0x33a   : > { %v847_v57 = vpop.f32.mrf.mxu1 }
 0x33c   : > { %v851_v58 = vpop.f32.mrf.mxu1 }
 0x33d   : > { %911 = vrot.lane.b32.xlu1 %v847_v57, %s1311_s22  ;;  %899 = vrot.lane.b32.xlu0 %v847_v57, %s1310_s21 }
 0x33e   : > { %v853_v30 = vpop.f32.mrf.mxu1 }
 0x340   : > { %v857_v59 = vpop.f32.mrf.mxu1 }
 0x341   : > { %949 = vrot.lane.b32.xlu1 %v851_v58, %s1312_s23  ;;  %945 = vrot.lane.b32.xlu0 %v853_v30, %s1312_s23 }
 0x342   : > { %v859_v60 = vpop.f32.mrf.mxu1 }
 0x344   : > { %v863_v61 = vpop.f32.mrf.mxu1 }
 0x345   : > { %982 = vrot.lane.b32.xlu1 %v857_v59, %s1310_s21  ;;  %970 = vrot.lane.b32.xlu0 %v857_v59, %s1311_s22 }
 0x346   : > { %v865_v29 = vpop.f32.mrf.mxu1 }
 0x348   : > { %v1776_v63 = vpop.f32.mrf.mxu1 }
 0x349   : > { %979 = vrot.lane.b32.xlu0 %v859_v60, %s1310_s21  ;;  %972 = vrot.lane.b32.xlu1 %v859_v60, %s1311_s22 }
 0x34a   : > { %v1780_v0 = vpop.f32.mrf.mxu1 }
 0x34c   : > { %v875_v28 = vpop.f32.mrf.mxu1 }
 0x34e   : > { %v877_v2 = vpop.f32.mrf.mxu1 }
 0x350   : > { %v881_v3 = vpop.f32.mrf.mxu1 }
 0x351   : > { %1075 = vrot.lane.b32.xlu0 %v881_v3, %s1311_s22  ;;  %1069 = vrot.lane.b32.xlu1 %v881_v3, %s1310_s21 }
 0x352   : > { %v883_v7 = vpop.f32.mrf.mxu1 }
 0x354   : > { %v887_v8 = vpop.f32.mrf.mxu1 }
 0x355   : > { %1077 = vrot.lane.b32.xlu1 %v883_v7, %s1311_s22  ;;  %1065 = vrot.lane.b32.xlu0 %v883_v7, %s1310_s21 }
 0x356   : > { %v889_v10 = vpop.f32.mrf.mxu1 }
 0x358   : > { %v893_v11 = vpop.f32.mrf.mxu1 }
 0x359   : > { %1148 = vrot.lane.b32.xlu1 %v893_v11, %s1310_s21  ;;  %1136 = vrot.lane.b32.xlu0 %v893_v11, %s1311_s22 }
 0x35a   : > { %v895_v13 = vpop.f32.mrf.mxu1 }
 0x35d   : > { %1145 = vrot.lane.b32.xlu0 %v895_v13, %s1310_s21  ;;  %1138 = vrot.lane.b32.xlu1 %v895_v13, %s1311_s22 }
 0x361   : > { %955 = vrot.lane.b32.xlu0 %v851_v58, %s1313_s24  ;;  %957 = vrot.lane.b32.xlu1 %v853_v30, %s1313_s24 }
 0x365   : > { %1015 = vrot.lane.b32.xlu0 %v865_v29, %s1310_s21  ;;  %1019 = vrot.lane.b32.xlu1 %v863_v61, %s1310_s21 }
 0x369   : > { %1025 = vrot.lane.b32.xlu0 %v863_v61, %s1311_s22  ;;  %1027 = vrot.lane.b32.xlu1 %v865_v29, %s1311_s22 }
 0x36d   : > { %1042 = vrot.lane.b32.xlu0 %v875_v28, %s1311_s22  ;;  %1044 = vrot.lane.b32.xlu1 %v877_v2, %s1311_s22 }
 0x371   : > { %1051 = vrot.lane.b32.xlu0 %v877_v2, %s1310_s21  ;;  %1054 = vrot.lane.b32.xlu1 %v875_v28, %s1310_s21 }
 0x375   : > { %1112 = vrot.lane.b32.xlu0 %v887_v8, %s1313_s24  ;;  %1114 = vrot.lane.b32.xlu1 %v889_v10, %s1313_s24 }
 0x379   : > { %1121 = vrot.lane.b32.xlu0 %v889_v10, %s1312_s23  ;;  %1124 = vrot.lane.b32.xlu1 %v887_v8, %s1312_s23 }
 0x3ab   : > { %v910_v14 = vpop.permute.xlu0 %909  ;;  %v904_v17 = vpop.permute.xlu1 %903 }
 0x3af   : > { %v912_v18 = vpop.permute.xlu1 %911  ;;  %v900_v20 = vpop.permute.xlu0 %899 }
 0x3b0   : > { %v913_v21 = vsel %vm221_vm0, %v910_v14, %v912_v18  ;;  %v917_v25 = vsel %vm221_vm0, %v912_v18, %v910_v14  ;;  %v905_v26 = vsel %vm212_vm1, %v904_v17, %v900_v20  ;;  %v908_v43 = vsel %vm212_vm1, %v900_v20, %v904_v17 }
 0x3b1   : > { %v919_v46 = vsel %vm228_vm5, %v917_v25, %v905_v26  ;;  %v918_v44 = vsel %vm227_vm4, %v913_v21, %v908_v43 }
 0x3b2   : > { %921 = vrot.lane.b32.xlu0 %v919_v46, %s1312_s23  ;;  %925 = vrot.lane.b32.xlu1 %v918_v44, %s1312_s23 }
 0x3b3   : > { %v950_v45 = vpop.permute.xlu1 %949  ;;  %v946_v41 = vpop.permute.xlu0 %945 }
 0x3b4   : > { %v1815_v48 = vsel %vm238_vm6, %v950_v45, %v946_v41  ;;  %v1818_v39 = vsel %vm238_vm6, %v946_v41, %v950_v45 }
 0x3b6   : > { %931 = vrot.lane.b32.xlu0 %v918_v44, %s1313_s24  ;;  %933 = vrot.lane.b32.xlu1 %v919_v46, %s1313_s24 }
 0x3b7   : > { %v983_v49 = vpop.permute.xlu1 %982  ;;  %v971_v37 = vpop.permute.xlu0 %970 }
 0x3bb   : > { %v980_v50 = vpop.permute.xlu0 %979  ;;  %v973_v35 = vpop.permute.xlu1 %972 }
 0x3bc   : > { %v984_v36 = vsel %vm212_vm1, %v983_v49, %v980_v50  ;;  %v987_v38 = vsel %vm212_vm1, %v980_v50, %v983_v49  ;;  %v974_v40 = vsel %vm221_vm0, %v971_v37, %v973_v35  ;;  %v978_v42 = vsel %vm221_vm0, %v973_v35, %v971_v37  ;;  %v1300_v49 = vld [vmem:[%s1354_s20] sm:$0xff]  ;;  %v1301_v50 = vld [vmem:[%s1354_s20 + $0x8] sm:$0xff]  ;;  %s1286_s20 = sshll.u32 %s1955_s16, 3 }
 0x3bd   : > { %v989_v47 = vsel %vm278_vm3, %v984_v36, %v978_v42  ;;  %v988_v27 = vsel %vm277_vm2, %v987_v38, %v974_v40 }
 0x3be   : > { %991 = vrot.lane.b32.xlu0 %v989_v47, %s1312_s23  ;;  %995 = vrot.lane.b32.xlu1 %v988_v27, %s1312_s23 }
 0x3c2   : > { %1001 = vrot.lane.b32.xlu0 %v988_v27, %s1313_s24  ;;  %1003 = vrot.lane.b32.xlu1 %v989_v47, %s1313_s24 }
 0x3c3   : > { %v1076_v22 = vpop.permute.xlu0 %1075  ;;  %v1070_v15 = vpop.permute.xlu1 %1069 }
 0x3c7   : > { %v1078_v12 = vpop.permute.xlu1 %1077  ;;  %v1066_v1 = vpop.permute.xlu0 %1065 }
 0x3c8   : > { %v1079_v62 = vsel %vm221_vm0, %v1076_v22, %v1078_v12  ;;  %v1083_v6 = vsel %vm221_vm0, %v1078_v12, %v1076_v22  ;;  %v1071_v9 = vsel %vm212_vm1, %v1070_v15, %v1066_v1  ;;  %v1074_v19 = vsel %vm212_vm1, %v1066_v1, %v1070_v15 }
 0x3c9   : > { %v1084_v51 = vsel %vm227_vm4, %v1079_v62, %v1074_v19  ;;  %v1085_v16 = vsel %vm228_vm5, %v1083_v6, %v1071_v9 }
 0x3ca   : > { %1088 = vrot.lane.b32.xlu0 %v1084_v51, %s1313_s24  ;;  %1090 = vrot.lane.b32.xlu1 %v1085_v16, %s1313_s24 }
 0x3cb   : > { %v1149_v34 = vpop.permute.xlu1 %1148  ;;  %v1137_v52 = vpop.permute.xlu0 %1136 }
 0x3ce   : > { %1097 = vrot.lane.b32.xlu0 %v1085_v16, %s1312_s23  ;;  %1100 = vrot.lane.b32.xlu1 %v1084_v51, %s1312_s23 }
 0x3cf   : > { %v1146_v53 = vpop.permute.xlu0 %1145  ;;  %v1139_v33 = vpop.permute.xlu1 %1138 }
 0x3d0   : > { %v1150_v32 = vsel %vm212_vm1, %v1149_v34, %v1146_v53  ;;  %v1153_v54 = vsel %vm212_vm1, %v1146_v53, %v1149_v34  ;;  %v1140_v55 = vsel %vm221_vm0, %v1137_v52, %v1139_v33  ;;  %v1144_v56 = vsel %vm221_vm0, %v1139_v33, %v1137_v52 }
 0x3d1   : > { %v1155_v31 = vsel %vm278_vm3, %v1150_v32, %v1144_v56  ;;  %v1154_v57 = vsel %vm277_vm2, %v1153_v54, %v1140_v55 }
 0x3d2   : > { %1160 = vrot.lane.b32.xlu1 %v1155_v31, %s1313_s24  ;;  %1158 = vrot.lane.b32.xlu0 %v1154_v57, %s1313_s24 }
 0x3d3   : > { %v956_v58 = vpop.permute.xlu0 %955  ;;  %v958_v30 = vpop.permute.xlu1 %957 }
 0x3d4   : > { %v959_v45 = vsel %vm247_vm7, %v956_v58, %v958_v30  ;;  %v963_v41 = vsel %vm247_vm7, %v958_v30, %v956_v58 }
 0x3d5   : > { %v964_v40 = vsel %vm253_vm11, %v959_v45, %v1818_v39  ;;  %v965_v42 = vsel %vm254_vm10, %v963_v41, %v1815_v48 }
 0x3d6   : > { %1170 = vrot.lane.b32.xlu1 %v1154_v57, %s1312_s23  ;;  %1167 = vrot.lane.b32.xlu0 %v1155_v31, %s1312_s23  ;;  %s197_s23 = scalar_lea.vmem %s1953_s4, %s1286_s20 }
 0x3d7   : > { %v1016_v59 = vpop.permute.xlu0 %1015  ;;  %v1020_v60 = vpop.permute.xlu1 %1019 }
 0x3d8   : > { %v1021_v34 = vsel %vm212_vm1, %v1020_v60, %v1016_v59  ;;  %v1024_v52 = vsel %vm212_vm1, %v1016_v59, %v1020_v60 }
 0x3db   : > { %v1026_v61 = vpop.permute.xlu0 %1025  ;;  %v1028_v29 = vpop.permute.xlu1 %1027 }
 0x3dc   : > { %v1029_v48 = vsel %vm221_vm0, %v1026_v61, %v1028_v29  ;;  %v1033_v19 = vsel %vm221_vm0, %v1028_v29, %v1026_v61 }
 0x3dd   : > { %v1034_v53 = vsel %vm227_vm4, %v1029_v48, %v1024_v52  ;;  %v1035_v33 = vsel %vm228_vm5, %v1033_v19, %v1021_v34 }
 0x3df   : > { %v1043_v28 = vpop.permute.xlu0 %1042  ;;  %v1045_v2 = vpop.permute.xlu1 %1044 }
 0x3e0   : > { %v1046_v59 = vsel %vm221_vm0, %v1043_v28, %v1045_v2  ;;  %v1050_v60 = vsel %vm221_vm0, %v1045_v2, %v1043_v28 }
 0x3e3   : > { %v1052_v3 = vpop.permute.xlu0 %1051  ;;  %v1055_v7 = vpop.permute.xlu1 %1054 }
 0x3e4   : > { %v1056_v31 = vsel %vm212_vm1, %v1055_v7, %v1052_v3  ;;  %v1059_v57 = vsel %vm212_vm1, %v1052_v3, %v1055_v7 }
 0x3e5   : > { %v1060_v3 = vsel %vm277_vm2, %v1059_v57, %v1046_v59 }
 0x3e7   : > { %v1858_v8 = vpop.permute.xlu0 %1112  ;;  %v1860_v10 = vpop.permute.xlu1 %1114 }
 0x3eb   : > { %v1862_v11 = vpop.permute.xlu0 %1121  ;;  %v1864_v13 = vpop.permute.xlu1 %1124 }
 0x3ec   : > { %v1129_v4 = vsel %vm238_vm6, %v1862_v11, %v1864_v13 }
 0x424   : > { %v922_v14 = vpop.permute.xlu0 %921  ;;  %v926_v17 = vpop.permute.xlu1 %925 }
 0x425   : > { %v927_v26 = vsel %vm238_vm6, %v926_v17, %v922_v14  ;;  %v930_v43 = vsel %vm238_vm6, %v922_v14, %v926_v17 }
 0x428   : > { %v932_v18 = vpop.permute.xlu0 %931  ;;  %v934_v20 = vpop.permute.xlu1 %933 }
 0x429   : > { %v935_v21 = vsel %vm247_vm7, %v932_v18, %v934_v20  ;;  %v939_v25 = vsel %vm247_vm7, %v934_v20, %v932_v18 }
 0x42a   : > { %v940_v46 = vsel %vm253_vm11, %v935_v21, %v930_v43  ;;  %v941_v44 = vsel %vm254_vm10, %v939_v25, %v927_v26  ;;  %v1126_v26 = vsel %vm238_vm6, %v1864_v13, %v1862_v11 }
 0x42b   : > { %v942_v37 = vadd.f32 %v1300_v49, %v940_v46  ;;  %v943_v35 = vadd.f32 %v1301_v50, %v941_v44  ;;  %v1116_v46 = vsel %vm247_vm7, %v1858_v8, %v1860_v10  ;;  %v1120_v44 = vsel %vm247_vm7, %v1860_v10, %v1858_v8 }
 0x42c   : > { %v1130_v45 = vsel %vm303_vm9, %v1129_v4, %v1116_v46  ;;  %v1131_v41 = vsel %vm304_vm8, %v1126_v26, %v1120_v44 }
 0x42d   : > { %v966_v27 = vadd.f32 %v964_v40, %v942_v37  ;;  %v967_v22 = vadd.f32 %v965_v42, %v943_v35 }
 0x430   : > { %v992_v36 = vpop.permute.xlu0 %991  ;;  %v996_v38 = vpop.permute.xlu1 %995 }
 0x431   : > { %v997_v12 = vsel %vm238_vm6, %v996_v38, %v992_v36  ;;  %v1000_v1 = vsel %vm238_vm6, %v992_v36, %v996_v38 }
 0x434   : > { %v1002_v47 = vpop.permute.xlu0 %1001  ;;  %v1004_v15 = vpop.permute.xlu1 %1003 }
 0x435   : > { %v1005_v62 = vsel %vm247_vm7, %v1002_v47, %v1004_v15  ;;  %v1009_v6 = vsel %vm247_vm7, %v1004_v15, %v1002_v47 }
 0x436   : > { %v1010_v9 = vsel %vm253_vm11, %v1005_v62, %v1000_v1  ;;  %v1011_v39 = vsel %vm254_vm10, %v1009_v6, %v997_v12 }
 0x437   : > { %v1012_v51 = vadd.f32 %v1010_v9, %v966_v27  ;;  %v1013_v16 = vadd.f32 %v1011_v39, %v967_v22 }
 0x439   : > { %v1036_v32 = vadd.f32 %v1034_v53, %v1012_v51  ;;  %v1037_v54 = vadd.f32 %v1035_v33, %v1013_v16 }
 0x43b   : > { %v1038_v58 = vadd.f32 %v1036_v32, %v1776_v63  ;;  %v1039_v30 = vadd.f32 %v1037_v54, %v1780_v0  ;;  %v1061_v63 = vsel %vm278_vm3, %v1056_v31, %v1050_v60 }
 0x43c   : > { %v1089_v55 = vpop.permute.xlu0 %1088  ;;  %v1091_v56 = vpop.permute.xlu1 %1090 }
 0x43d   : > { %v1092_v14 = vsel %vm247_vm7, %v1089_v55, %v1091_v56  ;;  %v1096_v17 = vsel %vm247_vm7, %v1091_v56, %v1089_v55  ;;  %v1062_v2 = vadd.f32 %v1060_v3, %v1038_v58  ;;  %v1063_v7 = vadd.f32 %v1061_v63, %v1039_v30 }
 0x440   : > { %v1098_v61 = vpop.permute.xlu0 %1097  ;;  %v1101_v29 = vpop.permute.xlu1 %1100 }
 0x441   : > { %v1102_v18 = vsel %vm238_vm6, %v1101_v29, %v1098_v61  ;;  %v1105_v20 = vsel %vm238_vm6, %v1098_v61, %v1101_v29 }
 0x442   : > { %v1106_v0 = vsel %vm303_vm9, %v1105_v20, %v1092_v14  ;;  %v1107_v28 = vsel %vm304_vm8, %v1102_v18, %v1096_v17 }
 0x443   : > { %v1108_v5 = vadd.f32 %v1106_v0, %v1062_v2  ;;  %v1109_v43 = vadd.f32 %v1107_v28, %v1063_v7 }
 0x444   : > { %v1159_v21 = vpop.permute.xlu0 %1158  ;;  %v1161_v25 = vpop.permute.xlu1 %1160 }
 0x445   : > { %v1162_v49 = vsel %vm247_vm7, %v1159_v21, %v1161_v25  ;;  %v1166_v11 = vsel %vm247_vm7, %v1161_v25, %v1159_v21  ;;  %v1132_v50 = vadd.f32 %v1130_v45, %v1108_v5  ;;  %v1133_v35 = vadd.f32 %v1131_v41, %v1109_v43 }
 0x448   : > { %v1168_v13 = vpop.permute.xlu0 %1167  ;;  %v1171_v37 = vpop.permute.xlu1 %1170 }
 0x449   : > { %v1172_v36 = vsel %vm238_vm6, %v1171_v37, %v1168_v13  ;;  %v1175_v38 = vsel %vm238_vm6, %v1168_v13, %v1171_v37 }
 0x44a   : > { %v1176_v8 = vsel %vm303_vm9, %v1175_v38, %v1162_v49  ;;  %v1177_v10 = vsel %vm304_vm8, %v1172_v36, %v1166_v11 }
 0x44b   : > { %v1178_v40 = vadd.f32 %v1176_v8, %v1132_v50  ;;  %v1179_v42 = vadd.f32 %v1177_v10, %v1133_v35 }
 0x44d   : > { %v1182_v47 = vcombine.low %v1178_v40, %v1179_v42 }
 0x44f   : > { %1184 = vst [vmem:[%s197_s23] sm:$0xff] %v1182_v47 }
 0x450 PF: > { %s14_s15 = sadd.s32 1, %s1308_s15  }
 0x451   : > { %p11_p4 = scmp.ge.s32.totalorder %s14_s15, 4  }
 0x453   :  { %13 = sbr.rel (!%p11_p4) target bundleno = 1 (0x1), region = 67 }

</bundles_post_ra>
